<compile_context>
chip_gen: v7x
topology: tpu7x:2x2x1
jax: 0.10.0
libtpu: 0.0.40
codegen_flags: <defaults>
</compile_context>

<pallas_src>
import numpy as np

import jax
import jax.numpy as jnp
from jax.experimental import pallas as pl
from jax.experimental.pallas import tpu as pltpu


def _bbox_pe_kernel(x_ref, w_ref, aux_ref, factor_ref, o_ref):
    # x tile in caller's dtype; upcast once in VMEM.
    x = x_ref[...].astype(jnp.float32)                        # (bm, lane_in)
    # 2-pass "f32" matmul: x = hi + lo (err ~2^-18*|x|); W is 0/1 so exact in bf16.
    x_hi = x.astype(jnp.bfloat16)
    x_lo = (x - x_hi.astype(jnp.float32)).astype(jnp.bfloat16)
    lhs = jnp.concatenate([x_hi, x_lo], axis=-1)              # (bm, 2*lane_in) bf16
    raw = jax.lax.dot_general(
        lhs, w_ref[...],
        dimension_numbers=(((1,), (0,)), ((), ())),
        preferred_element_type=jnp.float32,
    )                                                         # (bm, lane_out) = replicated x
    scale = aux_ref[0:1, :]                                   # inv_freq / scaling_ratio per lane
    phase = aux_ref[1:2, :]                                   # 0 on sin lanes, pi/2 on cos lanes
    emb = jnp.sin(raw * scale + phase)                        # single EUP transcendental / elem
    o_ref[...] = (emb * factor_ref[0]).astype(o_ref.dtype)


def bbox_position_encoding_pallas(x, inv_freq, factor, *, scaling_ratio=128.0,
                                  target_block_bytes=4 * 1024 * 1024):
    """x: (..., D) bbox coords. inv_freq: (F,). factor: scalar parameter.
    Returns (..., D * 2 * F) in x.dtype, matching BBoxPositionEncoding.forward (eval)."""
    out_dtype = x.dtype
    lead_shape = x.shape[:-1]
    D = int(x.shape[-1])
    inv_freq = np.asarray(inv_freq, np.float64)
    F = int(inv_freq.shape[0])
    two_f = 2 * F
    out_per_row = D * two_f                         # output features per bbox

    M = int(np.prod(lead_shape)) if lead_shape else 1

    # Grouping factor: lane_in = G*D multiple of 128 => dense x loads + full MXU
    # contraction; lane_out = G*out_per_row is then also a multiple of 128
    # (dense stores).  Fall back to the minimal output-aligned G if the dense
    # choice would blow up the constant matrix (unusual D).
    G = int(np.lcm(D, 128) // D)
    if G * D > 512:
        G = int(np.lcm(out_per_row, 128) // out_per_row)
    lane_in = G * D
    lane_out = G * out_per_row

    # Pad rows only to the G*8 quantum (super-rows exist and are sublane aligned).
    row_quant = G * 8
    M_pad = -(-M // row_quant) * row_quant
    x2 = x.reshape(M, D)                            # native dtype, free reshape
    if M_pad != M:
        x2 = jnp.pad(x2, ((0, M_pad - M), (0, 0)))
    n_super = M_pad // G
    x_super = x2.reshape(n_super, lane_in)          # pure reshape, no HBM pass

    # Block rows: ~target_block_bytes of in+out traffic per grid step, multiple of 8.
    bytes_per_super_row = (lane_in * np.dtype(x.dtype).itemsize
                           + lane_out * np.dtype(out_dtype).itemsize)
    block_rows = max(8, (int(target_block_bytes // bytes_per_super_row) // 8) * 8)
    if block_rows >= n_super:
        block_rows = n_super
        if n_super >= 16:
            # Split into >=2 steps so the "parallel" axis can feed both
            # TensorCores on multi-core parts (v7x).
            half = ((n_super + 1) // 2 + 7) // 8 * 8
            if half < n_super:
                block_rows = half
    grid = (pl.cdiv(n_super, block_rows),)          # ragged final block is OK

    # Constant 0/1 replication matrix, stacked for the [hi | lo] contraction.
    c = np.arange(lane_out)
    rep = np.zeros((lane_in, lane_out), np.float32)
    rep[c // two_f, c] = 1.0
    w = jnp.asarray(np.concatenate([rep, rep], axis=0), dtype=jnp.bfloat16)  # (2*lane_in, lane_out)

    # Per-lane scale (inv_freq / scaling_ratio) and phase (0 -> sin, pi/2 -> cos).
    scale_row = (inv_freq[(c % two_f) % F] / float(scaling_ratio)).astype(np.float32)
    phase_row = np.where((c % two_f) < F, 0.0, np.pi / 2.0).astype(np.float32)
    aux = jnp.asarray(np.stack([scale_row, phase_row], axis=0))              # (2, lane_out) f32

    factor_arr = jnp.asarray(factor, jnp.float32).reshape((1,))

    out_super = pl.pallas_call(
        _bbox_pe_kernel,
        out_shape=jax.ShapeDtypeStruct((n_super, lane_out), out_dtype),
        grid_spec=pltpu.PrefetchScalarGridSpec(
            num_scalar_prefetch=0,
            grid=grid,
            in_specs=[
                pl.BlockSpec((block_rows, lane_in), lambda i: (i, 0)),       # x tile
                pl.BlockSpec((2 * lane_in, lane_out), lambda i: (0, 0)),     # W (const)
                pl.BlockSpec((2, lane_out), lambda i: (0, 0)),               # scale / phase
                pl.BlockSpec(memory_space=pltpu.MemorySpace.SMEM),           # factor
            ],
            out_specs=pl.BlockSpec((block_rows, lane_out), lambda i: (i, 0)),
        ),
        compiler_params=pltpu.CompilerParams(
            dimension_semantics=("parallel",),
            vmem_limit_bytes=32 * 1024 * 1024,
        ),
    )(x_super, w, aux, factor_arr)

    # Ungroup (free reshape), drop padding only if it was added, restore lead dims.
    out = out_super.reshape(M_pad, out_per_row)
    if M_pad != M:
        out = out[:M]
    return out.reshape(lead_shape + (out_per_row,))


if __name__ == "__main__":
    key = jax.random.PRNGKey(0)

    # Module config: BBoxPositionEncoding(input_shape=(B, 32), dim=4)
    batch, num_boxes, bbox_dim = 2, 8, 4
    raw_channels = 32
    dim = 4
    scaling_ratio = 128.0
    factor_ratio = 0.75                          # nn.Parameter(torch.ones(1) * factor_ratio)

    channels = int(np.ceil(raw_channels / (dim * 2)) * dim)                   # 16
    inv_freq = (1.0 / 10.0 ** (np.arange(0, channels, dim, dtype=np.float32)
                               / np.float32(channels))).astype(np.float32)    # (4,)
    F = int(inv_freq.shape[0])
    factor = np.float32(factor_ratio)

    # bbox coordinates roughly in [0, 128) pixel units
    x = 128.0 * jax.random.uniform(key, (batch, num_boxes, bbox_dim),
                                   dtype=jnp.float32)

    out = bbox_position_encoding_pallas(x, inv_freq, factor,
                                        scaling_ratio=scaling_ratio)
    out = jax.block_until_ready(out)

    # Pure-JAX reference replicating the PyTorch forward (eval mode).
    inv_freq_j = jnp.asarray(inv_freq)
    xs = x / scaling_ratio
    pos = xs[..., None] * inv_freq_j                                          # (..., 4, 4)
    ref = jnp.concatenate([jnp.sin(pos), jnp.cos(pos)], axis=-1)              # (..., 4, 8)
    ref = ref.reshape(x.shape[:-1] + (bbox_dim * 2 * F,)) * factor

    assert out.shape == ref.shape, (out.shape, ref.shape)
    max_err = float(jnp.max(jnp.abs(out.astype(jnp.float32) - ref)))
    assert max_err < 2e-5, f"max abs err {max_err}"
    print("KERNEL_OK")
</pallas_src>

<mosaic_0001>
module attributes {stable_mosaic.version = 11 : i64} {
  func.func @_bbox_pe_kernel(%arg0: i32, %arg1: memref<8x128xf32, #tpu.memory_space<vmem>>, %arg2: memref<256x1024xbf16, #tpu.memory_space<vmem>>, %arg3: memref<2x1024xf32, #tpu.memory_space<vmem>>, %arg4: memref<1xf32, #tpu.memory_space<smem>>, %arg5: memref<8x1024xf32, #tpu.memory_space<vmem>>) attributes {dimension_semantics = [#tpu.dimension_semantics<parallel>], iteration_bounds = array<i64: 1>, scalar_prefetch = 0 : i64, scratch_operands = 0 : i64, tpu.core_type = #tpu.core_type<tc>, window_params = [{transform_indices = @transform_0, window_bounds = array<i64: 8, 128>}, {pipeline_mode = #tpu.pipeline_mode<synchronous>, transform_indices = @transform_1, window_bounds = array<i64: 256, 1024>}, {pipeline_mode = #tpu.pipeline_mode<synchronous>, transform_indices = @transform_2, window_bounds = array<i64: 2, 1024>}, {transform_indices = @transform_3, window_bounds = array<i64: 1>}, {transform_indices = @transform_4, window_bounds = array<i64: 8, 1024>}]} {
    %c0 = arith.constant 0 : index
    %c0_0 = arith.constant 0 : index
    %0 = vector.load %arg1[%c0, %c0_0] : memref<8x128xf32, #tpu.memory_space<vmem>>, vector<8x128xf32>
    %1 = arith.truncf %0 : vector<8x128xf32> to vector<8x128xbf16>
    %2 = arith.extf %1 : vector<8x128xbf16> to vector<8x128xf32>
    %3 = arith.subf %0, %2 : vector<8x128xf32>
    %4 = arith.truncf %3 : vector<8x128xf32> to vector<8x128xbf16>
    %5 = tpu.concatenate %1, %4 in 1 : vector<8x128xbf16>, vector<8x128xbf16> -> vector<8x256xbf16>
    %c0_1 = arith.constant 0 : index
    %c0_2 = arith.constant 0 : index
    %6 = vector.load %arg2[%c0_1, %c0_2] : memref<256x1024xbf16, #tpu.memory_space<vmem>>, vector<256x1024xbf16>
    %cst = arith.constant dense<0.000000e+00> : vector<8x1024xf32>
    %7 = tpu.matmul %5, %6, %cst {dimension_numbers = #tpu.dot_dimension_numbers<[1], [0], [0], [1], [0, 0, 1, 1], [], []>} : vector<8x256xbf16>, vector<256x1024xbf16>, vector<8x1024xf32> -> vector<8x1024xf32>
    %c0_3 = arith.constant 0 : index
    %c0_4 = arith.constant 0 : index
    %8 = vector.load %arg3[%c0_3, %c0_4] : memref<2x1024xf32, #tpu.memory_space<vmem>>, vector<1x1024xf32>
    %c1 = arith.constant 1 : index
    %c0_5 = arith.constant 0 : index
    %9 = vector.load %arg3[%c1, %c0_5] : memref<2x1024xf32, #tpu.memory_space<vmem>>, vector<1x1024xf32>
    %10 = vector.broadcast %8 : vector<1x1024xf32> to vector<8x1024xf32>
    %11 = arith.mulf %7, %10 : vector<8x1024xf32>
    %12 = vector.broadcast %9 : vector<1x1024xf32> to vector<8x1024xf32>
    %13 = arith.addf %11, %12 : vector<8x1024xf32>
    %14 = math.sin %13 : vector<8x1024xf32>
    %c0_6 = arith.constant 0 : index
    %15 = memref.load %arg4[%c0_6] : memref<1xf32, #tpu.memory_space<smem>>
    %16 = vector.broadcast %15 : f32 to vector<8x1024xf32>
    %17 = arith.mulf %14, %16 : vector<8x1024xf32>
    %c0_7 = arith.constant 0 : index
    %c0_8 = arith.constant 0 : index
    %18 = vector.load %arg5[%c0_7, %c0_8] : memref<8x1024xf32, #tpu.memory_space<vmem>>, vector<8x1024xf32>
    tpu.vector_store %arg5[%c0_7, %c0_8], %17 {strides = array<i32>} : memref<8x1024xf32, #tpu.memory_space<vmem>>, vector<8x1024xf32>,
    return
  }
  func.func @transform_0(%arg0: i32) -> (i32, i32) {
    %c0_i32 = arith.constant 0 : i32
    %c0_i32_0 = arith.constant 0 : i32
    return %arg0, %c0_i32 : i32, i32
  }
  func.func @transform_1(%arg0: i32) -> (i32, i32) {
    %c0_i32 = arith.constant 0 : i32
    %c0_i32_0 = arith.constant 0 : i32
    %c0_i32_1 = arith.constant 0 : i32
    return %c0_i32, %c0_i32_0 : i32, i32
  }
  func.func @transform_2(%arg0: i32) -> (i32, i32) {
    %c0_i32 = arith.constant 0 : i32
    %c0_i32_0 = arith.constant 0 : i32
    %c0_i32_1 = arith.constant 0 : i32
    return %c0_i32, %c0_i32_0 : i32, i32
  }
  func.func @transform_3(%arg0: i32) -> i32 {
    %c0_i32 = arith.constant 0 : i32
    %c0_i32_0 = arith.constant 0 : i32
    return %c0_i32 : i32
  }
  func.func @transform_4(%arg0: i32) -> (i32, i32) {
    %c0_i32 = arith.constant 0 : i32
    %c0_i32_0 = arith.constant 0 : i32
    return %arg0, %c0_i32 : i32, i32
  }
}

</mosaic_0001>

<bundles_post_ra>
// kernel: tpu_custom_call.1
= control target key start
LH: loop header
LB: loop body
LE: loop exit
PB: predicated region body
PF: predicated region fallthrough
CT: control target
= control target key end

     0   :  { %10 = vsyncpa [#allocation4], 0  ;;  %s3101_s0 = inlined_call_operand.hbm [shape: f32[8,128], index: 0, kind: input, shape index: {}]   ;;  %s3102_s1 = inlined_call_operand.hbm [shape: bf16[256,1024], index: 1, kind: input, shape index: {}]   ;;  %s3103_s2 = inlined_call_operand.hbm [shape: f32[2,1024], index: 2, kind: input, shape index: {}]   ;;  %s3104_s3 = inlined_call_operand.<no memory space> [shape: f32[1], index: 3, kind: input, shape index: {}]   ;;  %s3105_s4 = inlined_call_operand.hbm [shape: f32[8,1024], index: 4, kind: output, shape index: {}]  }
   0x1   :  { %11 = vsyncpa [#allocation7], 0 }
   0x2   :  { %12 = vsyncpa [#allocation5], 0  ;;  %s2292_s15 = smov [#allocation6]   ;;  %s2198_s19 = scalar_lea.hbm %s3102_s1, 16384 }
   0x3   :  { %s28_s16 = sshll.u32 %s2292_s15, 4  ;;  %p2199_p0 = scmp.ne.s32.totalorder %s3102_s1, %s2198_s19  ;;  %s29_s16 = int_to_ptr.vmem [resolvable:$true] %s28_s16 }
   0x4   :  { %p2202_p1 = scmp.lt.u32.totalorder %s2198_s19, %s3102_s1 }
   0x6   :  { %p2204_p2 = pnand %p2202_p1, %p2199_p0 }
   0x8   :  { %2207 = shalt.err (!%p2204_p2)
}
   0x9   :  { %s2208_s24 = scalar_lea.vmem %s29_s16, 16384  ;;  %p2213_p4 = scmp.lt.s32.totalorder %s29_s16, %s29_s16 }
   0xa   :  { %p2209_p3 = scmp.ne.s32.totalorder %s29_s16, %s2208_s24  ;;  %p2214_p5 = scmp.lt.s32.totalorder %s2208_s24, %s2208_s24 }
   0xc   :  { %p2215_p6 = por %p2214_p5, %p2213_p4 }
   0xe   :  { %p2216_p7 = pnand %p2215_p6, %p2209_p3 }
  0x10   :  { %2219 = shalt.err (!%p2216_p7)
}
  0x11   :  { %s2293_s25 = smov 512   ;;  %s2294_s26 = smov 32  }
  0x12   :  { %34 = dma.hbm_to_vmem [thread:$0]  %s3102_s1, 16384, %s29_s16, [#allocation7], %s2293_s25, %s2293_s25, %s2294_s26  }
  0x13   :  { %s2295_s29 = smov [#allocation3]   ;;  %s2296_s5 = smov [#allocation8]  }
  0x14   :  { %s19_s30 = sshll.u32 %s2295_s29, 4  ;;  %s41_s6 = sshll.u32 %s2296_s5, 4  ;;  %s20_s30 = int_to_ptr.vmem [resolvable:$true] %s19_s30  ;;  %s42_s6 = int_to_ptr.vmem [resolvable:$true] %s41_s6 }
  0x15   :  { %s2220_s9 = scalar_lea.hbm %s3101_s0, 128 }
  0x16   :  { %p2221_p8 = scmp.ne.s32.totalorder %s3101_s0, %s2220_s9  ;;  %p2224_p9 = scmp.lt.u32.totalorder %s2220_s9, %s3101_s0 }
  0x18   :  { %p2226_p10 = pnand %p2224_p9, %p2221_p8 }
  0x1a   :  { %2229 = shalt.err (!%p2226_p10)
}
  0x1b   :  { %s2230_s1 = scalar_lea.vmem %s20_s30, 128  ;;  %p2235_p12 = scmp.lt.s32.totalorder %s20_s30, %s20_s30 }
  0x1c   :  { %p2231_p11 = scmp.ne.s32.totalorder %s20_s30, %s2230_s1  ;;  %p2236_p13 = scmp.lt.s32.totalorder %s2230_s1, %s2230_s1 }
  0x1e   :  { %p2237_p0 = por %p2236_p13, %p2235_p12 }
  0x20   :  { %p2238_p1 = pnand %p2237_p0, %p2231_p11 }
  0x22   :  { %2241 = shalt.err (!%p2238_p1)
}
  0x23   :  { %22 = dma.hbm_to_vmem [thread:$0]  %s3101_s0, 128, %s20_s30, [#allocation4]  }
  0x24   :  { %s2242_s18 = scalar_lea.hbm %s3103_s2, 256 }
  0x25   :  { %p2243_p2 = scmp.ne.s32.totalorder %s3103_s2, %s2242_s18  ;;  %p2246_p3 = scmp.lt.u32.totalorder %s2242_s18, %s3103_s2 }
  0x27   :  { %p2248_p4 = pnand %p2246_p3, %p2243_p2 }
  0x29   :  { %2251 = shalt.err (!%p2248_p4)
}
  0x2a   :  { %s2252_s23 = scalar_lea.vmem %s42_s6, 256  ;;  %p2257_p6 = scmp.lt.s32.totalorder %s42_s6, %s42_s6 }
  0x2b   :  { %p2253_p5 = scmp.ne.s32.totalorder %s42_s6, %s2252_s23  ;;  %p2258_p7 = scmp.lt.s32.totalorder %s2252_s23, %s2252_s23 }
  0x2d   :  { %p2259_p8 = por %p2258_p7, %p2257_p6 }
  0x2f   :  { %p2260_p9 = pnand %p2259_p8, %p2253_p5 }
  0x31   :  { %2263 = shalt.err (!%p2260_p9)
}
  0x32   :  { %44 = dma.hbm_to_vmem [thread:$0]  %s3103_s2, 256, %s42_s6, [#allocation7]  }
  0x33   :  { %2286 = dma.done.wait [#allocation4], 128  }
  0x34   :  { %2287 = vsyncadd [#allocation4], 4294967168 }
  0x35   :  { %2288 = dma.done.wait [#allocation7], 16640  }
  0x36   :  { %2289 = vsyncadd [#allocation7], 4294950656  ;;  %v61_v0 = vld [vmem:[#allocation6] sm:$0xff]  ;;  %v62_v2 = vld [vmem:[#allocation6 + $0x8] sm:$0xff] }
  0x37   :  { %v65_v1 = vld [vmem:[#allocation6 + $0x20] sm:$0xff]  ;;  %v66_v4 = vld [vmem:[#allocation6 + $0x28] sm:$0xff]  ;;  %v56_v53 = vld [vmem:[#allocation3] sm:$0xff] }
  0x38   :  { %v1961_v3 = vcombine.high %v61_v0, %v65_v1  ;;  %v1960_v5 = vcombine.low %v61_v0, %v65_v1  ;;  %v69_v6 = vld [vmem:[#allocation6 + $0x40] sm:$0xff]  ;;  %v1963_v8 = vcombine.high %v62_v2, %v66_v4  ;;  %v1962_v9 = vcombine.low %v62_v2, %v66_v4  ;;  %v70_v11 = vld [vmem:[#allocation6 + $0x48] sm:$0xff] }
  0x39   :  { %v73_v7 = vld [vmem:[#allocation6 + $0x60] sm:$0xff]  ;;  %v74_v12 = vld [vmem:[#allocation6 + $0x68] sm:$0xff]  ;;  %v2365_v57 = vpack.c.bf16 %v56_v53, %v56_v53 }
  0x3a   :  { %v1969_v10 = vcombine.high %v69_v6, %v73_v7  ;;  %v77_v13 = vld [vmem:[#allocation6 + $0x80] sm:$0xff]  ;;  %829 = vmatprep.subr.bf16.mxu0 %v1961_v3  ;;  %v1971_v14 = vcombine.high %v70_v11, %v74_v12  ;;  %v78_v16 = vld [vmem:[#allocation6 + $0x88] sm:$0xff]  ;;  %870 = vmatprep.subr.bf16.mxu1 %v1963_v8  ;;  %v1968_v18 = vcombine.low %v69_v6, %v73_v7 }
  0x3b   :  { %v81_v15 = vld [vmem:[#allocation6 + $0xa0] sm:$0xff]  ;;  %v82_v17 = vld [vmem:[#allocation6 + $0xa8] sm:$0xff]  ;;  %830 = vmatpush1.bf16.msra.mxu0 %v1960_v5  ;;  %871 = vmatpush1.bf16.msra.mxu1 %v1962_v9  ;;  %v1970_v19 = vcombine.low %v70_v11, %v74_v12  ;;  %v58_v61 = vunpack.c.l.bf16 %v2365_v57 }
  0x3c   :  { %831 = vmatprep.subr.bf16.mxu0 %v1969_v10  ;;  %v1977_v20 = vcombine.high %v77_v13, %v81_v15  ;;  %872 = vmatprep.subr.bf16.mxu1 %v1971_v14  ;;  %v1979_v21 = vcombine.high %v78_v16, %v82_v17  ;;  %v85_v22 = vld [vmem:[#allocation6 + $0xc0] sm:$0xff]  ;;  %v86_v24 = vld [vmem:[#allocation6 + $0xc8] sm:$0xff]  ;;  %v1976_v26 = vcombine.low %v77_v13, %v81_v15 }
  0x3d   :  { %v89_v23 = vld [vmem:[#allocation6 + $0xe0] sm:$0xff]  ;;  %v90_v25 = vld [vmem:[#allocation6 + $0xe8] sm:$0xff]  ;;  %v1978_v27 = vcombine.low %v78_v16, %v82_v17  ;;  %v59_v3 = vsub.f32 %v56_v53, %v58_v61 }
  0x3e   :  { %v1985_v28 = vcombine.high %v85_v22, %v89_v23  ;;  %v1987_v29 = vcombine.high %v86_v24, %v90_v25  ;;  %v93_v30 = vld [vmem:[#allocation6 + $0x100] sm:$0xff]  ;;  %v94_v32 = vld [vmem:[#allocation6 + $0x108] sm:$0xff]  ;;  %v1984_v34 = vcombine.low %v85_v22, %v89_v23  ;;  %v1986_v35 = vcombine.low %v86_v24, %v90_v25 }
  0x3f   :  { %832 = vmatpush1.bf16.msra.mxu0 %v1968_v18  ;;  %873 = vmatpush1.bf16.msra.mxu1 %v1970_v19  ;;  %v97_v31 = vld [vmem:[#allocation6 + $0x120] sm:$0xff]  ;;  %v98_v33 = vld [vmem:[#allocation6 + $0x128] sm:$0xff]  ;;  %v2368_v7 = vpack.c.bf16 %v59_v3, %v59_v3 }
  0x40   :  { %833 = vmatprep.subr.bf16.mxu0 %v1977_v20  ;;  %874 = vmatprep.subr.bf16.mxu1 %v1979_v21  ;;  %v1993_v36 = vcombine.high %v93_v30, %v97_v31  ;;  %v1995_v37 = vcombine.high %v94_v32, %v98_v33  ;;  %v101_v38 = vld [vmem:[#allocation6 + $0x140] sm:$0xff]  ;;  %v102_v40 = vld [vmem:[#allocation6 + $0x148] sm:$0xff]  ;;  %v1992_v42 = vcombine.low %v93_v30, %v97_v31 }
  0x41   :  { %v105_v39 = vld [vmem:[#allocation6 + $0x160] sm:$0xff]  ;;  %v106_v41 = vld [vmem:[#allocation6 + $0x168] sm:$0xff]  ;;  %v1994_v43 = vcombine.low %v94_v32, %v98_v33  ;;  %861 = vmatprep.mubr.bf16.mxu0 %v2368_v7  ;;  %902 = vmatprep.mubr.bf16.mxu1 %v2368_v7 }
  0x42   :  { %v2001_v44 = vcombine.high %v101_v38, %v105_v39  ;;  %v2003_v45 = vcombine.high %v102_v40, %v106_v41  ;;  %v109_v46 = vld [vmem:[#allocation6 + $0x180] sm:$0xff]  ;;  %v110_v48 = vld [vmem:[#allocation6 + $0x188] sm:$0xff]  ;;  %v2000_v50 = vcombine.low %v101_v38, %v105_v39  ;;  %v2002_v51 = vcombine.low %v102_v40, %v106_v41 }
  0x43   :  { %834 = vmatpush1.bf16.msra.mxu0 %v1976_v26  ;;  %875 = vmatpush1.bf16.msra.mxu1 %v1978_v27  ;;  %v113_v47 = vld [vmem:[#allocation6 + $0x1a0] sm:$0xff]  ;;  %v114_v49 = vld [vmem:[#allocation6 + $0x1a8] sm:$0xff] }
  0x44   :  { %835 = vmatprep.subr.bf16.mxu0 %v1985_v28  ;;  %876 = vmatprep.subr.bf16.mxu1 %v1987_v29  ;;  %v2009_v52 = vcombine.high %v109_v46, %v113_v47  ;;  %v2011_v54 = vcombine.high %v110_v48, %v114_v49  ;;  %v117_v55 = vld [vmem:[#allocation6 + $0x1c0] sm:$0xff]  ;;  %v118_v58 = vld [vmem:[#allocation6 + $0x1c8] sm:$0xff]  ;;  %v2008_v60 = vcombine.low %v109_v46, %v113_v47 }
  0x45   :  { %v121_v56 = vld [vmem:[#allocation6 + $0x1e0] sm:$0xff]  ;;  %v122_v59 = vld [vmem:[#allocation6 + $0x1e8] sm:$0xff]  ;;  %v2010_v62 = vcombine.low %v110_v48, %v114_v49 }
  0x46   :  { %v2017_v63 = vcombine.high %v117_v55, %v121_v56  ;;  %v2019_v0 = vcombine.high %v118_v58, %v122_v59  ;;  %v125_v1 = vld [vmem:[#allocation6 + $0x200] sm:$0xff]  ;;  %v126_v4 = vld [vmem:[#allocation6 + $0x208] sm:$0xff]  ;;  %v2016_v6 = vcombine.low %v117_v55, %v121_v56  ;;  %v2018_v8 = vcombine.low %v118_v58, %v122_v59 }
  0x47   :  { %836 = vmatpush1.bf16.msra.mxu0 %v1984_v34  ;;  %877 = vmatpush1.bf16.msra.mxu1 %v1986_v35  ;;  %v129_v2 = vld [vmem:[#allocation6 + $0x220] sm:$0xff]  ;;  %v130_v5 = vld [vmem:[#allocation6 + $0x228] sm:$0xff] }
  0x48   :  { %837 = vmatprep.subr.bf16.mxu0 %v1993_v36  ;;  %878 = vmatprep.subr.bf16.mxu1 %v1995_v37  ;;  %v2025_v9 = vcombine.high %v125_v1, %v129_v2  ;;  %v2027_v10 = vcombine.high %v126_v4, %v130_v5  ;;  %v133_v11 = vld [vmem:[#allocation6 + $0x240] sm:$0xff]  ;;  %v134_v13 = vld [vmem:[#allocation6 + $0x248] sm:$0xff]  ;;  %v2024_v15 = vcombine.low %v125_v1, %v129_v2 }
  0x49   :  { %v137_v12 = vld [vmem:[#allocation6 + $0x260] sm:$0xff]  ;;  %v138_v14 = vld [vmem:[#allocation6 + $0x268] sm:$0xff]  ;;  %v2026_v16 = vcombine.low %v126_v4, %v130_v5  ;;  %v63_v4 = vld [vmem:[#allocation6 + $0x10] sm:$0xff] }
  0x4a   :  { %v2033_v17 = vcombine.high %v133_v11, %v137_v12  ;;  %v2035_v18 = vcombine.high %v134_v13, %v138_v14  ;;  %v141_v19 = vld [vmem:[#allocation6 + $0x280] sm:$0xff]  ;;  %v142_v21 = vld [vmem:[#allocation6 + $0x288] sm:$0xff]  ;;  %v2032_v23 = vcombine.low %v133_v11, %v137_v12  ;;  %v2034_v24 = vcombine.low %v134_v13, %v138_v14  ;;  %v67_v5 = vld [vmem:[#allocation6 + $0x30] sm:$0xff] }
  0x4b   :  { %838 = vmatpush1.bf16.msra.mxu0 %v1992_v42  ;;  %879 = vmatpush1.bf16.msra.mxu1 %v1994_v43  ;;  %v145_v20 = vld [vmem:[#allocation6 + $0x2a0] sm:$0xff]  ;;  %v146_v22 = vld [vmem:[#allocation6 + $0x2a8] sm:$0xff]  ;;  %v1965_v11 = vcombine.high %v63_v4, %v67_v5  ;;  %v71_v13 = vld [vmem:[#allocation6 + $0x50] sm:$0xff] }
  0x4c   :  { %839 = vmatprep.subr.bf16.mxu0 %v2001_v44  ;;  %880 = vmatprep.subr.bf16.mxu1 %v2003_v45  ;;  %v2041_v25 = vcombine.high %v141_v19, %v145_v20  ;;  %v2043_v26 = vcombine.high %v142_v21, %v146_v22  ;;  %v149_v27 = vld [vmem:[#allocation6 + $0x2c0] sm:$0xff]  ;;  %v150_v29 = vld [vmem:[#allocation6 + $0x2c8] sm:$0xff]  ;;  %v2040_v31 = vcombine.low %v141_v19, %v145_v20  ;;  %v75_v14 = vld [vmem:[#allocation6 + $0x70] sm:$0xff] }
  0x4d   :  { %v153_v28 = vld [vmem:[#allocation6 + $0x2e0] sm:$0xff]  ;;  %v154_v30 = vld [vmem:[#allocation6 + $0x2e8] sm:$0xff]  ;;  %v2042_v32 = vcombine.low %v142_v21, %v146_v22  ;;  %v1973_v19 = vcombine.high %v71_v13, %v75_v14  ;;  %v79_v21 = vld [vmem:[#allocation6 + $0x90] sm:$0xff] }
  0x4e   :  { %v2049_v33 = vcombine.high %v149_v27, %v153_v28  ;;  %v2051_v34 = vcombine.high %v150_v29, %v154_v30  ;;  %v157_v35 = vld [vmem:[#allocation6 + $0x300] sm:$0xff]  ;;  %v158_v37 = vld [vmem:[#allocation6 + $0x308] sm:$0xff]  ;;  %v2048_v39 = vcombine.low %v149_v27, %v153_v28  ;;  %v2050_v40 = vcombine.low %v150_v29, %v154_v30  ;;  %v83_v22 = vld [vmem:[#allocation6 + $0xb0] sm:$0xff] }
  0x4f   :  { %840 = vmatpush1.bf16.msra.mxu0 %v2000_v50  ;;  %881 = vmatpush1.bf16.msra.mxu1 %v2002_v51  ;;  %v161_v36 = vld [vmem:[#allocation6 + $0x320] sm:$0xff]  ;;  %v162_v38 = vld [vmem:[#allocation6 + $0x328] sm:$0xff]  ;;  %v1981_v27 = vcombine.high %v79_v21, %v83_v22  ;;  %v87_v29 = vld [vmem:[#allocation6 + $0xd0] sm:$0xff] }
  0x50   :  { %841 = vmatprep.subr.bf16.mxu0 %v2009_v52  ;;  %882 = vmatprep.subr.bf16.mxu1 %v2011_v54  ;;  %v2057_v41 = vcombine.high %v157_v35, %v161_v36  ;;  %v2059_v42 = vcombine.high %v158_v37, %v162_v38  ;;  %v165_v43 = vld [vmem:[#allocation6 + $0x340] sm:$0xff]  ;;  %v166_v45 = vld [vmem:[#allocation6 + $0x348] sm:$0xff]  ;;  %v2056_v47 = vcombine.low %v157_v35, %v161_v36  ;;  %v91_v30 = vld [vmem:[#allocation6 + $0xf0] sm:$0xff] }
  0x51   :  { %v169_v44 = vld [vmem:[#allocation6 + $0x360] sm:$0xff]  ;;  %v170_v46 = vld [vmem:[#allocation6 + $0x368] sm:$0xff]  ;;  %v2058_v48 = vcombine.low %v158_v37, %v162_v38  ;;  %v1989_v35 = vcombine.high %v87_v29, %v91_v30  ;;  %v95_v37 = vld [vmem:[#allocation6 + $0x110] sm:$0xff] }
  0x52   :  { %v2065_v49 = vcombine.high %v165_v43, %v169_v44  ;;  %v2067_v50 = vcombine.high %v166_v45, %v170_v46  ;;  %v173_v51 = vld [vmem:[#allocation6 + $0x380] sm:$0xff]  ;;  %v174_v53 = vld [vmem:[#allocation6 + $0x388] sm:$0xff]  ;;  %v2064_v55 = vcombine.low %v165_v43, %v169_v44  ;;  %v2066_v56 = vcombine.low %v166_v45, %v170_v46  ;;  %v99_v38 = vld [vmem:[#allocation6 + $0x130] sm:$0xff] }
  0x53   :  { %842 = vmatpush1.bf16.msra.mxu0 %v2008_v60  ;;  %883 = vmatpush1.bf16.msra.mxu1 %v2010_v62  ;;  %v177_v52 = vld [vmem:[#allocation6 + $0x3a0] sm:$0xff]  ;;  %v178_v54 = vld [vmem:[#allocation6 + $0x3a8] sm:$0xff]  ;;  %v1997_v43 = vcombine.high %v95_v37, %v99_v38  ;;  %v103_v44 = vld [vmem:[#allocation6 + $0x150] sm:$0xff] }
  0x54   :  { %843 = vmatprep.subr.bf16.mxu0 %v2017_v63  ;;  %884 = vmatprep.subr.bf16.mxu1 %v2019_v0  ;;  %v2073_v58 = vcombine.high %v173_v51, %v177_v52  ;;  %v2075_v59 = vcombine.high %v174_v53, %v178_v54  ;;  %v181_v60 = vld [vmem:[#allocation6 + $0x3c0] sm:$0xff]  ;;  %v182_v62 = vld [vmem:[#allocation6 + $0x3c8] sm:$0xff]  ;;  %v2072_v0 = vcombine.low %v173_v51, %v177_v52  ;;  %v107_v45 = vld [vmem:[#allocation6 + $0x170] sm:$0xff] }
  0x55   :  { %v185_v61 = vld [vmem:[#allocation6 + $0x3e0] sm:$0xff]  ;;  %v186_v63 = vld [vmem:[#allocation6 + $0x3e8] sm:$0xff]  ;;  %v2074_v1 = vcombine.low %v174_v53, %v178_v54  ;;  %v104_v46 = vld [vmem:[#allocation6 + $0x158] sm:$0xff] }
  0x56   :  { %v2081_v2 = vcombine.high %v181_v60, %v185_v61  ;;  %v2083_v3 = vcombine.high %v182_v62, %v186_v63  ;;  %v111_v52 = vld [vmem:[#allocation6 + $0x190] sm:$0xff]  ;;  %v112_v54 = vld [vmem:[#allocation6 + $0x198] sm:$0xff] }
  0x57   :  { %844 = vmatpush1.bf16.msra.mxu0 %v2016_v6  ;;  %885 = vmatpush1.bf16.msra.mxu1 %v2018_v8  ;;  %v64_v6 = vld [vmem:[#allocation6 + $0x18] sm:$0xff]  ;;  %v115_v53 = vld [vmem:[#allocation6 + $0x1b0] sm:$0xff] }
  0x58   :  { %845 = vmatprep.subr.bf16.mxu0 %v2025_v9  ;;  %886 = vmatprep.subr.bf16.mxu1 %v2027_v10  ;;  %v68_v8 = vld [vmem:[#allocation6 + $0x38] sm:$0xff]  ;;  %v2080_v9 = vcombine.low %v181_v60, %v185_v61  ;;  %v2082_v10 = vcombine.low %v182_v62, %v186_v63  ;;  %v119_v61 = vld [vmem:[#allocation6 + $0x1d0] sm:$0xff] }
  0x59   :  { %v1967_v12 = vcombine.high %v64_v6, %v68_v8  ;;  %v123_v62 = vld [vmem:[#allocation6 + $0x1f0] sm:$0xff]  ;;  %v120_v63 = vld [vmem:[#allocation6 + $0x1d8] sm:$0xff] }
  0x5b   :  { %846 = vmatpush1.bf16.msra.mxu0 %v2024_v15  ;;  %887 = vmatpush1.bf16.msra.mxu1 %v2026_v16  ;;  %v72_v15 = vld [vmem:[#allocation6 + $0x58] sm:$0xff] }
  0x5c   :  { %847 = vmatprep.subr.bf16.mxu0 %v2033_v17  ;;  %888 = vmatprep.subr.bf16.mxu1 %v2035_v18  ;;  %v76_v16 = vld [vmem:[#allocation6 + $0x78] sm:$0xff]  ;;  %v1964_v17 = vcombine.low %v63_v4, %v67_v5  ;;  %v1966_v18 = vcombine.low %v64_v6, %v68_v8  ;;  %v127_v5 = vld [vmem:[#allocation6 + $0x210] sm:$0xff] }
  0x5d   :  { %v1975_v20 = vcombine.high %v72_v15, %v76_v16  ;;  %v131_v6 = vld [vmem:[#allocation6 + $0x230] sm:$0xff]  ;;  %v128_v8 = vld [vmem:[#allocation6 + $0x218] sm:$0xff] }
  0x5f   :  { %848 = vmatpush1.bf16.msra.mxu0 %v2032_v23  ;;  %889 = vmatpush1.bf16.msra.mxu1 %v2034_v24  ;;  %v80_v23 = vld [vmem:[#allocation6 + $0x98] sm:$0xff] }
  0x60   :  { %849 = vmatprep.subr.bf16.mxu0 %v2041_v25  ;;  %890 = vmatprep.subr.bf16.mxu1 %v2043_v26  ;;  %v84_v24 = vld [vmem:[#allocation6 + $0xb8] sm:$0xff]  ;;  %v1972_v25 = vcombine.low %v71_v13, %v75_v14  ;;  %v1974_v26 = vcombine.low %v72_v15, %v76_v16  ;;  %v135_v14 = vld [vmem:[#allocation6 + $0x250] sm:$0xff] }
  0x61   :  { %v1983_v28 = vcombine.high %v80_v23, %v84_v24  ;;  %v139_v15 = vld [vmem:[#allocation6 + $0x270] sm:$0xff]  ;;  %v136_v16 = vld [vmem:[#allocation6 + $0x258] sm:$0xff] }
  0x63   :  { %850 = vmatpush1.bf16.msra.mxu0 %v2040_v31  ;;  %891 = vmatpush1.bf16.msra.mxu1 %v2042_v32  ;;  %v88_v31 = vld [vmem:[#allocation6 + $0xd8] sm:$0xff] }
  0x64   :  { %851 = vmatprep.subr.bf16.mxu0 %v2049_v33  ;;  %892 = vmatprep.subr.bf16.mxu1 %v2051_v34  ;;  %v92_v32 = vld [vmem:[#allocation6 + $0xf8] sm:$0xff]  ;;  %v1980_v33 = vcombine.low %v79_v21, %v83_v22  ;;  %v1982_v34 = vcombine.low %v80_v23, %v84_v24  ;;  %v143_v22 = vld [vmem:[#allocation6 + $0x290] sm:$0xff] }
  0x65   :  { %v1991_v36 = vcombine.high %v88_v31, %v92_v32  ;;  %v147_v23 = vld [vmem:[#allocation6 + $0x2b0] sm:$0xff]  ;;  %v144_v24 = vld [vmem:[#allocation6 + $0x298] sm:$0xff] }
  0x67   :  { %852 = vmatpush1.bf16.msra.mxu0 %v2048_v39  ;;  %893 = vmatpush1.bf16.msra.mxu1 %v2050_v40  ;;  %v96_v39 = vld [vmem:[#allocation6 + $0x118] sm:$0xff] }
  0x68   :  { %853 = vmatprep.subr.bf16.mxu0 %v2057_v41  ;;  %894 = vmatprep.subr.bf16.mxu1 %v2059_v42  ;;  %v100_v40 = vld [vmem:[#allocation6 + $0x138] sm:$0xff]  ;;  %v1988_v41 = vcombine.low %v87_v29, %v91_v30  ;;  %v1990_v42 = vcombine.low %v88_v31, %v92_v32  ;;  %v151_v30 = vld [vmem:[#allocation6 + $0x2d0] sm:$0xff] }
  0x69   :  { %v155_v31 = vld [vmem:[#allocation6 + $0x2f0] sm:$0xff]  ;;  %v152_v32 = vld [vmem:[#allocation6 + $0x2d8] sm:$0xff] }
  0x6b   :  { %854 = vmatpush1.bf16.msra.mxu0 %v2056_v47  ;;  %895 = vmatpush1.bf16.msra.mxu1 %v2058_v48  ;;  %v108_v47 = vld [vmem:[#allocation6 + $0x178] sm:$0xff]  ;;  %v1996_v48 = vcombine.low %v95_v37, %v99_v38  ;;  %v159_v38 = vld [vmem:[#allocation6 + $0x310] sm:$0xff] }
  0x6c   :  { %855 = vmatprep.subr.bf16.mxu0 %v2065_v49  ;;  %896 = vmatprep.subr.bf16.mxu1 %v2067_v50  ;;  %v1998_v49 = vcombine.low %v96_v39, %v100_v40  ;;  %v2005_v50 = vcombine.high %v103_v44, %v107_v45  ;;  %v2007_v51 = vcombine.high %v104_v46, %v108_v47 }
  0x6f   :  { %856 = vmatpush1.bf16.msra.mxu0 %v2064_v55  ;;  %897 = vmatpush1.bf16.msra.mxu1 %v2066_v56  ;;  %v116_v55 = vld [vmem:[#allocation6 + $0x1b8] sm:$0xff]  ;;  %v2004_v56 = vcombine.low %v103_v44, %v107_v45  ;;  %v167_v45 = vld [vmem:[#allocation6 + $0x350] sm:$0xff] }
  0x70   :  { %857 = vmatprep.subr.bf16.mxu0 %v2073_v58  ;;  %898 = vmatprep.subr.bf16.mxu1 %v2075_v59  ;;  %v2006_v58 = vcombine.low %v104_v46, %v108_v47  ;;  %v2013_v59 = vcombine.high %v111_v52, %v115_v53  ;;  %v2015_v60 = vcombine.high %v112_v54, %v116_v55  ;;  %v171_v46 = vld [vmem:[#allocation6 + $0x370] sm:$0xff]  ;;  %v168_v47 = vld [vmem:[#allocation6 + $0x358] sm:$0xff] }
  0x73   :  { %858 = vmatpush1.bf16.msra.mxu0 %v2072_v0  ;;  %899 = vmatpush1.bf16.msra.mxu1 %v2074_v1  ;;  %v124_v0 = vld [vmem:[#allocation6 + $0x1f8] sm:$0xff]  ;;  %v2012_v1 = vcombine.low %v111_v52, %v115_v53  ;;  %v175_v53 = vld [vmem:[#allocation6 + $0x390] sm:$0xff] }
  0x74   :  { %859 = vmatprep.subr.bf16.mxu0 %v2081_v2  ;;  %900 = vmatprep.subr.bf16.mxu1 %v2083_v3  ;;  %v2014_v2 = vcombine.low %v112_v54, %v116_v55  ;;  %v2021_v3 = vcombine.high %v119_v61, %v123_v62  ;;  %v2023_v4 = vcombine.high %v120_v63, %v124_v0  ;;  %v179_v54 = vld [vmem:[#allocation6 + $0x3b0] sm:$0xff]  ;;  %v176_v55 = vld [vmem:[#allocation6 + $0x398] sm:$0xff] }
  0x77   :  { %860 = vmatpush1.bf16.msra.mxu0 %v2080_v9  ;;  %901 = vmatpush1.bf16.msra.mxu1 %v2082_v10  ;;  %v132_v9 = vld [vmem:[#allocation6 + $0x238] sm:$0xff]  ;;  %v2020_v10 = vcombine.low %v119_v61, %v123_v62  ;;  %v183_v62 = vld [vmem:[#allocation6 + $0x3d0] sm:$0xff] }
  0x78   :  { %911 = vmatprep.subr.bf16.mxu0 %v1965_v11  ;;  %952 = vmatprep.subr.bf16.mxu1 %v1967_v12  ;;  %v2022_v11 = vcombine.low %v120_v63, %v124_v0  ;;  %v2029_v12 = vcombine.high %v127_v5, %v131_v6  ;;  %v2031_v13 = vcombine.high %v128_v8, %v132_v9  ;;  %v187_v63 = vld [vmem:[#allocation6 + $0x3f0] sm:$0xff]  ;;  %v184_v0 = vld [vmem:[#allocation6 + $0x3d8] sm:$0xff] }
  0x7a   :  { %862 = vmatmul.mubr.bf16.vlgmr.msra.gmra.mrb[0].mxu0 %v2365_v57  ;;  %903 = vmatmul.mubr.bf16.vlgmr.msra.gmra.mrb[0].mxu1 %v2365_v57 }
  0x7b   :  { %912 = vmatpush1.bf16.msra.mxu0 %v1964_v17  ;;  %953 = vmatpush1.bf16.msra.mxu1 %v1966_v18  ;;  %v140_v17 = vld [vmem:[#allocation6 + $0x278] sm:$0xff]  ;;  %v2028_v18 = vcombine.low %v127_v5, %v131_v6  ;;  %v2084_v6 = vcombine.low %v183_v62, %v187_v63 }
  0x7c   :  { %913 = vmatprep.subr.bf16.mxu0 %v1973_v19  ;;  %954 = vmatprep.subr.bf16.mxu1 %v1975_v20  ;;  %v2030_v19 = vcombine.low %v128_v8, %v132_v9  ;;  %v2037_v20 = vcombine.high %v135_v14, %v139_v15  ;;  %v2039_v21 = vcombine.high %v136_v16, %v140_v17  ;;  %v997_v9 = vlaneseq }
  0x7d   :  { %943 = vmatprep.mubr.bf16.mxu0 %v2368_v7  ;;  %984 = vmatprep.mubr.bf16.mxu1 %v2368_v7  ;;  %v1999_v7 = vcombine.high %v96_v39, %v100_v40  ;;  %v163_v39 = vld [vmem:[#allocation6 + $0x330] sm:$0xff]  ;;  %v160_v40 = vld [vmem:[#allocation6 + $0x318] sm:$0xff] }
  0x7f   :  { %914 = vmatpush1.bf16.msra.mxu0 %v1972_v25  ;;  %955 = vmatpush1.bf16.msra.mxu1 %v1974_v26  ;;  %v148_v25 = vld [vmem:[#allocation6 + $0x2b8] sm:$0xff]  ;;  %v2036_v26 = vcombine.low %v135_v14, %v139_v15  ;;  %v2385_v15 = vld [vmem:[#allocation8 + $0x1] ss:$2 sm:$0xff] }
  0x80   :  { %915 = vmatprep.subr.bf16.mxu0 %v1981_v27  ;;  %956 = vmatprep.subr.bf16.mxu1 %v1983_v28  ;;  %v2038_v27 = vcombine.low %v136_v16, %v140_v17  ;;  %v2045_v28 = vcombine.high %v143_v22, %v147_v23  ;;  %v2047_v29 = vcombine.high %v144_v24, %v148_v25 }
  0x83   :  { %916 = vmatpush1.bf16.msra.mxu0 %v1980_v33  ;;  %957 = vmatpush1.bf16.msra.mxu1 %v1982_v34  ;;  %v156_v33 = vld [vmem:[#allocation6 + $0x2f8] sm:$0xff]  ;;  %v2044_v34 = vcombine.low %v143_v22, %v147_v23 }
  0x84   :  { %917 = vmatprep.subr.bf16.mxu0 %v1989_v35  ;;  %958 = vmatprep.subr.bf16.mxu1 %v1991_v36  ;;  %v2046_v35 = vcombine.low %v144_v24, %v148_v25  ;;  %v2053_v36 = vcombine.high %v151_v30, %v155_v31  ;;  %v2055_v37 = vcombine.high %v152_v32, %v156_v33 }
  0x87   :  { %918 = vmatpush1.bf16.msra.mxu0 %v1988_v41  ;;  %959 = vmatpush1.bf16.msra.mxu1 %v1990_v42  ;;  %v164_v41 = vld [vmem:[#allocation6 + $0x338] sm:$0xff]  ;;  %v2052_v42 = vcombine.low %v151_v30, %v155_v31 }
  0x88   :  { %919 = vmatprep.subr.bf16.mxu0 %v1997_v43  ;;  %960 = vmatprep.subr.bf16.mxu1 %v1999_v7  ;;  %v2054_v43 = vcombine.low %v152_v32, %v156_v33  ;;  %v2061_v7 = vcombine.high %v159_v38, %v163_v39  ;;  %v2063_v44 = vcombine.high %v160_v40, %v164_v41 }
  0x8b   :  { %920 = vmatpush1.bf16.msra.mxu0 %v1996_v48  ;;  %961 = vmatpush1.bf16.msra.mxu1 %v1998_v49  ;;  %v172_v48 = vld [vmem:[#allocation6 + $0x378] sm:$0xff]  ;;  %v2060_v49 = vcombine.low %v159_v38, %v163_v39 }
  0x8c   :  { %921 = vmatprep.subr.bf16.mxu0 %v2005_v50  ;;  %962 = vmatprep.subr.bf16.mxu1 %v2007_v51  ;;  %v2062_v50 = vcombine.low %v160_v40, %v164_v41  ;;  %v2069_v51 = vcombine.high %v167_v45, %v171_v46  ;;  %v2071_v52 = vcombine.high %v168_v47, %v172_v48 }
  0x8f   :  { %922 = vmatpush1.bf16.msra.mxu0 %v2004_v56  ;;  %963 = vmatpush1.bf16.msra.mxu1 %v2006_v58  ;;  %v180_v56 = vld [vmem:[#allocation6 + $0x3b8] sm:$0xff]  ;;  %v2068_v58 = vcombine.low %v167_v45, %v171_v46 }
  0x90   :  { %923 = vmatprep.subr.bf16.mxu0 %v2013_v59  ;;  %964 = vmatprep.subr.bf16.mxu1 %v2015_v60  ;;  %v2070_v59 = vcombine.low %v168_v47, %v172_v48  ;;  %v2077_v60 = vcombine.high %v175_v53, %v179_v54  ;;  %v2079_v61 = vcombine.high %v176_v55, %v180_v56 }
  0x93   :  { %924 = vmatpush1.bf16.msra.mxu0 %v2012_v1  ;;  %965 = vmatpush1.bf16.msra.mxu1 %v2014_v2  ;;  %v188_v1 = vld [vmem:[#allocation6 + $0x3f8] sm:$0xff]  ;;  %v2076_v2 = vcombine.low %v175_v53, %v179_v54 }
  0x94   :  { %925 = vmatprep.subr.bf16.mxu0 %v2021_v3  ;;  %966 = vmatprep.subr.bf16.mxu1 %v2023_v4  ;;  %v2078_v3 = vcombine.low %v176_v55, %v180_v56  ;;  %v2085_v4 = vcombine.high %v183_v62, %v187_v63  ;;  %v2087_v5 = vcombine.high %v184_v0, %v188_v1 }
  0x95   :  { %v2086_v8 = vcombine.low %v184_v0, %v188_v1 }
  0x97   :  { %926 = vmatpush1.bf16.msra.mxu0 %v2020_v10  ;;  %967 = vmatpush1.bf16.msra.mxu1 %v2022_v11  ;;  %v2378_v10 = vshrl.u32 %v997_v9, 7 }
  0x98   :  { %927 = vmatprep.subr.bf16.mxu0 %v2029_v12  ;;  %968 = vmatprep.subr.bf16.mxu1 %v2031_v13  ;;  %v2381_v12 = vld [vmem:[#allocation8] ss:$2 sm:$0xff] }
  0x99   :  { %v999_v11 = vsub.s32 0, %v2378_v10  ;;  %v1007_v13 = vsub.s32 2, %v2378_v10  ;;  %v1003_v14 = vsub.s32 1, %v2378_v10  ;;  %v1011_v30 = vsub.s32 3, %v2378_v10 }
  0x9b   :  { %928 = vmatpush1.bf16.msra.mxu0 %v2028_v18  ;;  %969 = vmatpush1.bf16.msra.mxu1 %v2030_v19  ;;  %v1000_v16 = vrot.slane %v2381_v12, %v999_v11  ;;  %v1008_v17 = vrot.slane %v2381_v12, %v1007_v13  ;;  %v1004_v18 = vrot.slane %v2381_v12, %v1003_v14 }
  0x9c   :  { %929 = vmatprep.subr.bf16.mxu0 %v2037_v20  ;;  %970 = vmatprep.subr.bf16.mxu1 %v2039_v21  ;;  %v1057_v20 = vrot.slane %v2385_v15, %v1007_v13  ;;  %v1053_v21 = vrot.slane %v2385_v15, %v1003_v14  ;;  %v2300_v14 = vmov 2102212464  }
  0x9f   :  { %930 = vmatpush1.bf16.msra.mxu0 %v2036_v26  ;;  %971 = vmatpush1.bf16.msra.mxu1 %v2038_v27 }
  0xa0   :  { %931 = vmatprep.subr.bf16.mxu0 %v2045_v28  ;;  %972 = vmatprep.subr.bf16.mxu1 %v2047_v29 }
  0xa3   :  { %932 = vmatpush1.bf16.msra.mxu0 %v2044_v34  ;;  %973 = vmatpush1.bf16.msra.mxu1 %v2046_v35 }
  0xa4   :  { %933 = vmatprep.subr.bf16.mxu0 %v2053_v36  ;;  %974 = vmatprep.subr.bf16.mxu1 %v2055_v37 }
  0xa7   :  { %934 = vmatpush1.bf16.msra.mxu0 %v2052_v42  ;;  %975 = vmatpush1.bf16.msra.mxu1 %v2054_v43  ;;  %v1012_v42 = vrot.slane %v2381_v12, %v1011_v30 }
  0xa8   :  { %935 = vmatprep.subr.bf16.mxu0 %v2061_v7  ;;  %976 = vmatprep.subr.bf16.mxu1 %v2063_v44 }
  0xab   :  { %936 = vmatpush1.bf16.msra.mxu0 %v2060_v49  ;;  %977 = vmatpush1.bf16.msra.mxu1 %v2062_v50 }
  0xac   :  { %937 = vmatprep.subr.bf16.mxu0 %v2069_v51  ;;  %978 = vmatprep.subr.bf16.mxu1 %v2071_v52  ;;  %v1061_v51 = vrot.slane %v2385_v15, %v1011_v30 }
  0xaf   :  { %938 = vmatpush1.bf16.msra.mxu0 %v2068_v58  ;;  %979 = vmatpush1.bf16.msra.mxu1 %v2070_v59 }
  0xb0   :  { %939 = vmatprep.subr.bf16.mxu0 %v2077_v60  ;;  %980 = vmatprep.subr.bf16.mxu1 %v2079_v61 }
  0xb3   :  { %940 = vmatpush1.bf16.msra.mxu0 %v2076_v2  ;;  %981 = vmatpush1.bf16.msra.mxu1 %v2078_v3  ;;  %v2297_v3 = vmov 683565275  }
  0xb4   :  { %941 = vmatprep.subr.bf16.mxu0 %v2085_v4  ;;  %982 = vmatprep.subr.bf16.mxu1 %v2087_v5 }
  0xb7   :  { %942 = vmatpush1.bf16.msra.mxu0 %v2084_v6  ;;  %983 = vmatpush1.bf16.msra.mxu1 %v2086_v8  ;;  %v2298_v8 = vmov 2475754826  }
  0xba   :  { %944 = vmatmul.mubr.bf16.vlgmr.msra.gmra.mrb[4].mxu0 %v2365_v57  ;;  %985 = vmatmul.mubr.bf16.vlgmr.msra.gmra.mrb[4].mxu1 %v2365_v57  ;;  %v1049_v57 = vrot.slane %v2385_v15, %v999_v11  ;;  %v2299_v11 = vmov 2131351028  }
 0x14d   :  { %v863_v19 = vpop.f32.mrb[0].mxu0  ;;  %v904_v23 = vpop.f32.mrb[0].mxu1 }
 0x14e   :  { %v1037_v22 = vmul.f32 %v1000_v16, %v863_v19  ;;  %v865_v24 = vpop.f32.mrb[1].mxu0  ;;  %v1039_v25 = vmul.f32 %v1008_v17, %v904_v23  ;;  %v906_v27 = vpop.f32.mrb[1].mxu1  ;;  %v2301_v17 = vmov 920167782   ;;  %v2302_v23 = vmov 1326507024  }
 0x14f   :  { %v1038_v26 = vmul.f32 %v1004_v18, %v865_v24  ;;  %v867_v28 = vpop.f32.mrb[2].mxu0  ;;  %v908_v31 = vpop.f32.mrb[2].mxu1  ;;  %v1040_v50 = vmul.f32 %v1012_v42, %v906_v27 }
 0x150   :  { %v2393_v29 = vadd.f32 %v1049_v57, %v1037_v22  ;;  %v868_v32 = vpop.f32.mrb[3].mxu0  ;;  %v2396_v33 = vadd.f32 %v1057_v20, %v1039_v25  ;;  %v909_v35 = vpop.f32.mrb[3].mxu1 }
 0x151   :  { %v2398_v34 = vadd.f32 %v1053_v21, %v1038_v26  ;;  %v2412_v61 = vadd.f32 %v1061_v51, %v1040_v50 }
 0x152   :  { %v1094_v36 = vand.u32 2147483647, %v2393_v29  ;;  %v1097_v37 = vand.u32 2139095040, %v2393_v29  ;;  %v1302_v38 = vand.u32 2147483647, %v2396_v33  ;;  %v1305_v39 = vand.u32 2139095040, %v2396_v33 }
 0x153   :  { %v1201_v44 = vand.u32 2139095040, %v2398_v34  ;;  %v1198_v54 = vand.u32 2147483647, %v2398_v34  ;;  %vm1096_vm13 = vcmp.lt.s32.totalorder %v2393_v29, 0  ;;  %vm1304_vm14 = vcmp.lt.s32.totalorder %v2396_v33, 0 }
 0x154   :  { %v1098_v40 = vshrl.u32 %v1097_v37, 23  ;;  %v1101_v41 = vand.u32 8388607, %v1094_v36  ;;  %v1306_v43 = vshrl.u32 %v1305_v39, 23  ;;  %v1309_v7 = vand.u32 8388607, %v1302_v38 }
 0x155   :  { %v1202_v47 = vshrl.u32 %v1201_v44, 23  ;;  %v2420_v0 = vand.u32 8388607, %v1198_v54 }
 0x156   :  { %v2088_v45 = vadd.s32 4294967169, %v1098_v40  ;;  %v2096_v46 = vadd.s32 4294967169, %v1306_v43  ;;  %v1102_v48 = vor.u32 8388608, %v1101_v41  ;;  %v1310_v52 = vor.u32 8388608, %v1309_v7 }
 0x157   :  { %v2092_v55 = vadd.s32 4294967169, %v1202_v47 }
 0x158   :  { %v1104_v49 = vadd.s32 1, %v2088_v45  ;;  %v1312_v53 = vadd.s32 1, %v2096_v46  ;;  %v2414_v62 = vshll.u32 %v1102_v48, 8  ;;  %v2416_v63 = vshll.u32 %v1310_v52, 8 }
 0x159   :  { %v2422_v1 = vadd.s32 1, %v2092_v55 }
 0x15a   :  { %vm1105_vm0 = vcmp.gt.s32.totalorder %v1104_v49, 0  ;;  %vm1313_vm1 = vcmp.gt.s32.totalorder %v1312_v53, 0 }
 0x15b   :  { %v1106_v56 = vsel %vm1105_vm0, %v1104_v49, 0  ;;  %v1314_v60 = vsel %vm1313_vm1, %v1312_v53, 0  ;;  %vm1209_vm6 = vcmp.gt.s32.totalorder %v2422_v1, 0  ;;  %vm2545_vm1 = vcmp.le.f32.partialorder %v1094_v36, 0.7853982 }
 0x15c   :  { %v1107_v58 = vshrl.u32 %v1106_v56, 5  ;;  %v1108_v59 = vand.u32 31, %v1106_v56  ;;  %v2425_v5 = vshrl.u32 %v1314_v60, 5  ;;  %v1316_v6 = vand.u32 31, %v1314_v60 }
 0x15e   :  { %v1109_v2 = vsub.s32 32, %v1108_v59  ;;  %v1111_v4 = vshll.u32 %v2297_v3, %v1108_v59  ;;  %v1114_v9 = vshll.u32 %v2298_v8, %v1108_v59  ;;  %v1117_v13 = vshll.u32 %v2299_v11, %v1108_v59 }
 0x15f   :  { %v1120_v16 = vshll.u32 %v2300_v14, %v1108_v59  ;;  %v1123_v18 = vshll.u32 %v2301_v17, %v1108_v59  ;;  %vm1126_vm2 = vcmp.lt.s32.totalorder %v1107_v58, 1  ;;  %vm1127_vm3 = vcmp.lt.s32.totalorder %v1107_v58, 2 }
 0x160   :  { %v1112_v57 = vshrl.u32 %v2298_v8, %v1109_v2  ;;  %v1115_v19 = vshrl.u32 %v2299_v11, %v1109_v2  ;;  %v1118_v20 = vshrl.u32 %v2300_v14, %v1109_v2  ;;  %v1110_v21 = vshrl.u32 %v2297_v3, %v1109_v2 }
 0x161   :  { %v1121_v22 = vshrl.u32 %v2301_v17, %v1109_v2  ;;  %v1124_v24 = vshrl.u32 %v2302_v23, %v1109_v2  ;;  %v1317_v28 = vsub.s32 32, %v1316_v6  ;;  %vm1128_vm4 = vcmp.lt.s32.totalorder %v1107_v58, 3 }
 0x162   :  { %v1113_v25 = vor.u32 %v1112_v57, %v1111_v4  ;;  %v1116_v26 = vor.u32 %v1115_v19, %v1114_v9  ;;  %v1119_v27 = vor.u32 %v1118_v20, %v1117_v13  ;;  %vm1129_vm5 = vcmp.lt.s32.totalorder %v1107_v58, 4 }
 0x163   :  { %v1122_v30 = vor.u32 %v1121_v22, %v1120_v16  ;;  %v1125_v31 = vor.u32 %v1124_v24, %v1123_v18  ;;  %v1319_v43 = vshll.u32 %v2297_v3, %v1316_v6  ;;  %v1320_v45 = vshrl.u32 %v2298_v8, %v1317_v28 }
 0x164   :  { %v1130_v32 = vsel %vm1126_vm2, %v1110_v21, %v1113_v25  ;;  %v1131_v35 = vsel %vm1129_vm5, %v1119_v27, 2102212464  ;;  %v1134_v37 = vsel %vm1126_vm2, %v1113_v25, %v1116_v26  ;;  %v1138_v39 = vsel %vm1126_vm2, %v1116_v26, %v1119_v27 }
 0x165   :  { %v1132_v40 = vsel %vm1128_vm4, %v1116_v26, %v1131_v35  ;;  %v1135_v41 = vsel %vm1129_vm5, %v1122_v30, 920167782  ;;  %v1139_v42 = vsel %vm1129_vm5, %v1125_v31, 1326507024  ;;  %v1322_v46 = vshll.u32 %v2298_v8, %v1316_v6 }
 0x166   :  { %v1136_v7 = vsel %vm1128_vm4, %v1119_v27, %v1135_v41  ;;  %v1140_v44 = vsel %vm1128_vm4, %v1122_v30, %v1139_v42  ;;  %v1133_v47 = vsel %vm1127_vm3, %v1130_v32, %v1132_v40  ;;  %v1323_v50 = vshrl.u32 %v2299_v11, %v1317_v28 }
 0x167   :  { %v1137_v48 = vsel %vm1127_vm3, %v1134_v37, %v1136_v7  ;;  %v1141_v49 = vsel %vm1127_vm3, %v1138_v39, %v1140_v44  ;;  %v1321_v56 = vor.u32 %v1320_v45, %v1319_v43  ;;  %v1325_v60 = vshll.u32 %v2299_v11, %v1316_v6 }
 0x168   :  { %v2449_v51 = vmul.u32.u64.low %v2414_v62, %v1141_v49  ;;  %v2450_v52 = vmul.u32.u64.high %v2414_v62, %v1141_v49, %v2449_v51  ;;  %v2453_v53 = vmul.u32.u64.low %v2414_v62, %v1137_v48  ;;  %v2454_v55 = vmul.u32.u64.high %v2414_v62, %v1137_v48, %v2453_v53 }
 0x169   :  { %v1324_v59 = vor.u32 %v1323_v50, %v1322_v46  ;;  %v1326_v2 = vshrl.u32 %v2300_v14, %v1317_v28  ;;  %v1318_v58 = vshrl.u32 %v2297_v3, %v1317_v28  ;;  %v1328_v4 = vshll.u32 %v2300_v14, %v1316_v6 }
 0x16a   :  { %v1329_v9 = vshrl.u32 %v2301_v17, %v1317_v28  ;;  %v1332_v13 = vshrl.u32 %v2302_v23, %v1317_v28  ;;  %v1149_v16 = vmul.u32 %v2414_v62, %v1133_v47  ;;  %v1331_v57 = vshll.u32 %v2301_v17, %v1316_v6 }
 0x16b   :  { %v1327_v18 = vor.u32 %v1326_v2, %v1325_v60  ;;  %vm1334_vm7 = vcmp.lt.s32.totalorder %v2425_v5, 1  ;;  %vm1151_vm8 = vc.u32 %v2450_v52, %v2453_v53  ;;  %v1152_v19 = vadd.s32 1, %v2454_v55 }
 0x16c   :  { %v1330_v20 = vor.u32 %v1329_v9, %v1328_v4  ;;  %vm1335_vm9 = vcmp.lt.s32.totalorder %v2425_v5, 2  ;;  %v1333_v21 = vor.u32 %v1332_v13, %v1331_v57  ;;  %vm1336_vm10 = vcmp.lt.s32.totalorder %v2425_v5, 3 }
 0x16d   :  { %vm1337_vm11 = vcmp.lt.s32.totalorder %v2425_v5, 4  ;;  %v1342_v22 = vsel %vm1334_vm7, %v1321_v56, %v1324_v59  ;;  %v1153_v62 = vsel %vm1151_vm8, %v1152_v19, %v2454_v55  ;;  %v1346_v25 = vsel %vm1334_vm7, %v1324_v59, %v1327_v18 }
 0x16e   :  { %v1339_v24 = vsel %vm1337_vm11, %v1327_v18, 2102212464  ;;  %v1343_v6 = vsel %vm1337_vm11, %v1330_v20, 920167782  ;;  %v1154_v26 = vadd.s32 %v1153_v62, %v1149_v16  ;;  %v1338_v27 = vsel %vm1334_vm7, %v1318_v58, %v1321_v56 }
 0x16f   :  { %v1344_v28 = vsel %vm1336_vm10, %v1327_v18, %v1343_v6  ;;  %v1347_v30 = vsel %vm1337_vm11, %v1333_v21, 1326507024  ;;  %v1340_v31 = vsel %vm1336_vm10, %v1324_v59, %v1339_v24  ;;  %v1210_v37 = vsel %vm1209_vm6, %v2422_v1, 0 }
 0x170   :  { %v1345_v32 = vsel %vm1335_vm9, %v1342_v22, %v1344_v28  ;;  %v1348_v35 = vsel %vm1336_vm10, %v1330_v20, %v1347_v30  ;;  %v1155_v39 = vadd.s32 536870912, %v1154_v26  ;;  %v1341_v45 = vsel %vm1335_vm9, %v1338_v27, %v1340_v31 }
 0x171   :  { %v1349_v40 = vsel %vm1335_vm9, %v1346_v25, %v1348_v35  ;;  %v2481_v41 = vmul.u32.u64.low %v2416_v63, %v1345_v32  ;;  %v2482_v42 = vmul.u32.u64.high %v2416_v63, %v1345_v32, %v2481_v41  ;;  %v1212_v46 = vand.u32 31, %v1210_v37 }
 0x172   :  { %v2486_v43 = vmul.u32.u64.low %v2416_v63, %v1349_v40  ;;  %v2487_v7 = vmul.u32.u64.high %v2416_v63, %v1349_v40, %v2486_v43  ;;  %v1156_v44 = vshrl.u32 %v1155_v39, 30  ;;  %v1015_v1 = vsub.s32 4, %v2378_v10 }
 0x173   :  { %v1206_v47 = vor.u32 8388608, %v2420_v0  ;;  %v1360_v49 = vadd.s32 1, %v2482_v42  ;;  %v2494_v50 = vsub.s32 32, %v1212_v46  ;;  %v1409_v51 = vand.u32 2139095040, %v2412_v61 }
 0x174   :  { %v1157_v48 = vshll.u32 %v1156_v44, 30  ;;  %v2500_v55 = vstv %s3104_s3  ;;  %v1357_v5 = vmul.u32 %v2416_v63, %v1341_v45  ;;  %vm1359_vm12 = vc.u32 %v2487_v7, %v2481_v41  ;;  %s2303_s3 = smov [#allocation9]  }
 0x175   :  { %v1023_v56 = vsub.s32 6, %v2378_v10  ;;  %v1361_v59 = vsel %vm1359_vm12, %v1360_v49, %v2482_v42  ;;  %v2512_v60 = vrot.slane %v2381_v12, %v1015_v1  ;;  %v1019_v2 = vsub.s32 5, %v2378_v10  ;;  %s1950_s26 = sshll.u32 %s2303_s3, 4  ;;  %s1951_s26 = int_to_ptr.vmem [resolvable:$true] %s1950_s26 }
 0x176   :  { %v2506_v0 = vsub.s32 %v1154_v26, %v1157_v48  ;;  %v1362_v58 = vadd.s32 %v1361_v59, %v1357_v5  ;;  %v1216_v63 = vshrl.u32 %v2298_v8, %v2494_v50  ;;  %v2518_v4 = vshll.u32 %v1206_v47, 8  ;;  %s2264_s27 = scalar_lea.vmem %s1951_s26, 1024  ;;  %p2269_p11 = scmp.lt.s32.totalorder %s1951_s26, %s1951_s26 }
 0x177   :  { %v1406_v9 = vand.u32 2147483647, %v2412_v61  ;;  %v1219_v16 = vshrl.u32 %v2299_v11, %v2494_v50  ;;  %v1222_v18 = vshrl.u32 %v2300_v14, %v2494_v50  ;;  %v1410_v57 = vshrl.u32 %v1409_v51, 23  ;;  %p2265_p10 = scmp.ne.s32.totalorder %s1951_s26, %s2264_s27  ;;  %p2270_p12 = scmp.lt.s32.totalorder %s2264_s27, %s2264_s27 }
 0x178   :  { %v1160_v13 = vsub.s32 0, %v2506_v0  ;;  %v1180_v19 = vsub.s32 4, %v1156_v44  ;;  %v1363_v20 = vadd.s32 536870912, %v1362_v58  ;;  %v2526_v21 = vshrl.u32 %v1210_v37, 5 }
 0x179   :  { %v1215_v22 = vshll.u32 %v2297_v3, %v1212_v46  ;;  %v1218_v24 = vshll.u32 %v2298_v8, %v1212_v46  ;;  %v1221_v6 = vshll.u32 %v2299_v11, %v1212_v46  ;;  %v1225_v25 = vshrl.u32 %v2301_v17, %v2494_v50  ;;  %p2271_p13 = por %p2270_p12, %p2269_p11 }
 0x17a   :  { %v2089_v62 = vmin.u32 %v1160_v13, %v2506_v0  ;;  %v1364_v26 = vshrl.u32 %v1363_v20, 30  ;;  %v1224_v28 = vshll.u32 %v2300_v14, %v1212_v46  ;;  %v1228_v30 = vshrl.u32 %v2302_v23, %v2494_v50 }
 0x17b   :  { %v1217_v27 = vor.u32 %v1216_v63, %v1215_v22  ;;  %v1220_v32 = vor.u32 %v1219_v16, %v1218_v24  ;;  %v1223_v35 = vor.u32 %v1222_v18, %v1221_v6  ;;  %v1227_v37 = vshll.u32 %v2301_v17, %v1212_v46  ;;  %p2272_p0 = pnand %p2271_p13, %p2265_p10 }
 0x17c   :  { %v1162_v31 = vclz %v2089_v62  ;;  %v1150_v39 = vadd.s32 %v2453_v53, %v2450_v52  ;;  %v1365_v40 = vshll.u32 %v1364_v26, 30  ;;  %v1226_v42 = vor.u32 %v1225_v25, %v1224_v28 }
 0x17d   :  { %v2100_v43 = vadd.s32 4294967169, %v1410_v57  ;;  %v1229_v47 = vor.u32 %v1228_v30, %v1227_v37  ;;  %vm1230_vm15 = vcmp.lt.s32.totalorder %v2526_v21, 1  ;;  %vm1233_vm0 = vcmp.lt.s32.totalorder %v2526_v21, 4 }
 0x17e   :  { %v2090_v45 = vadd.s32 4294967294, %v1162_v31  ;;  %v2549_v49 = vsub.s32 %v1362_v58, %v1365_v40  ;;  %vm1231_vm2 = vcmp.lt.s32.totalorder %v2526_v21, 2  ;;  %vm1232_vm3 = vcmp.lt.s32.totalorder %v2526_v21, 3 }
 0x17f   :  { %v1239_v52 = vsel %vm1233_vm0, %v1226_v42, 920167782  ;;  %v1181_v53 = vsel %vm1096_vm13, %v1180_v19, %v1156_v44  ;;  %vm2559_vm5 = vcmp.le.f32.partialorder %v1302_v38, 0.7853982  ;;  %v1238_v46 = vsel %vm1230_vm15, %v1217_v27, %v1220_v32 }
 0x180   :  { %vm2091_vm4 = vcmp.lt.s32.totalorder %v2090_v45, 0  ;;  %v1240_v51 = vsel %vm1232_vm3, %v1223_v35, %v1239_v52  ;;  %v1368_v59 = vsub.s32 0, %v2549_v49  ;;  %v1388_v58 = vsub.s32 4, %v1364_v26 }
 0x181   :  { %v1165_v5 = vsel %vm2091_vm4, 0, %v2090_v45  ;;  %v1242_v63 = vsel %vm1230_vm15, %v1220_v32, %v1223_v35  ;;  %v1235_v38 = vsel %vm1233_vm0, %v1223_v35, 2102212464  ;;  %v1243_v16 = vsel %vm1233_vm0, %v1229_v47, 1326507024 }
 0x182   :  { %v1166_v44 = vsub.s32 32, %v1165_v5  ;;  %v1170_v13 = vsub.s32 4294967266, %v1165_v5  ;;  %v2097_v18 = vmin.u32 %v1368_v59, %v2549_v49  ;;  %v1214_v57 = vshrl.u32 %v2297_v3, %v2494_v50 }
 0x183   :  { %v1241_v19 = vsel %vm1231_vm2, %v1238_v46, %v1240_v51  ;;  %v1244_v20 = vsel %vm1232_vm3, %v1226_v42, %v1243_v16  ;;  %v1167_v22 = vshll.u32 %v2506_v0, %v1165_v5  ;;  %v1389_v28 = vsel %vm1304_vm14, %v1388_v58, %v1364_v26 }
 0x184   :  { %v1168_v62 = vshrl.u32 %v1150_v39, %v1166_v44  ;;  %v1171_v24 = vadd.s32 127, %v1170_v13  ;;  %v1245_v6 = vsel %vm1231_vm2, %v1242_v63, %v1244_v20  ;;  %v1370_v25 = vclz %v2097_v18 }
 0x185   :  { %v1234_v50 = vsel %vm1230_vm15, %v1214_v57, %v1217_v27  ;;  %v1236_v30 = vsel %vm1232_vm3, %v1220_v32, %v1235_v38  ;;  %v2591_v37 = vmul.u32.u64.low %v2518_v4, %v1245_v6  ;;  %v2592_v0 = vmul.u32.u64.high %v2518_v4, %v1245_v6, %v2591_v37 }
 0x186   :  { %v1169_v31 = vor.u32 %v1168_v62, %v1167_v22  ;;  %v1172_v35 = vshll.u32 %v1171_v24, 23  ;;  %v2098_v39 = vadd.s32 4294967294, %v1370_v25  ;;  %v1416_v45 = vadd.s32 1, %v2100_v43 }
 0x187   :  { %v2595_v40 = vmul.u32.u64.low %v2518_v4, %v1241_v19  ;;  %v2596_v42 = vmul.u32.u64.high %v2518_v4, %v1241_v19, %v2595_v40  ;;  %v1183_v27 = vsel %vm2545_vm1, 0, %v1181_v53  ;;  %v1358_v32 = vadd.s32 %v2481_v41, %v2487_v7 }
 0x188   :  { %v1173_v26 = vor.u32 4788187, %v1172_v35  ;;  %v2605_v47 = vand.u32 8388607, %v1406_v9  ;;  %vm2099_vm6 = vcmp.lt.s32.totalorder %v2098_v39, 0  ;;  %v1391_v52 = vsel %vm2559_vm5, 0, %v1389_v28 }
 0x189   :  { %v1237_v46 = vsel %vm1231_vm2, %v1234_v50, %v1236_v30  ;;  %vm1417_vm7 = vcmp.gt.s32.totalorder %v1416_v45, 0  ;;  %v1176_v51 = vcvt.s32.f32 %v1169_v31  ;;  %v1373_v5 = vsel %vm2099_vm6, 0, %v2098_v39 }
 0x18a   :  { %v1174_v43 = vand.u32 2147483647, %v1173_v26  ;;  %vm1255_vm8 = vc.u32 %v2592_v0, %v2595_v40  ;;  %v1187_v53 = vadd.s32 3, %v1183_v27  ;;  %v1374_v41 = vsub.s32 32, %v1373_v5 }
 0x18b   :  { %v1378_v7 = vsub.s32 4294967266, %v1373_v5  ;;  %v1256_v59 = vadd.s32 1, %v2596_v42  ;;  %v1395_v63 = vadd.s32 3, %v1391_v52  ;;  %v1253_v44 = vmul.u32 %v2518_v4, %v1237_v46 }
 0x18c   :  { %v1177_v58 = vmul.f32 %v1176_v51, %v1174_v43  ;;  %v1418_v13 = vsel %vm1417_vm7, %v1416_v45, 0  ;;  %v1375_v21 = vshll.u32 %v2549_v49, %v1373_v5  ;;  %v1376_v16 = vshrl.u32 %v1358_v32, %v1374_v41 }
 0x18d   :  { %v945_v38 = vpop.f32.mrb[4].mxu0  ;;  %v1379_v18 = vadd.s32 127, %v1378_v7  ;;  %v1257_v57 = vsel %vm1255_vm8, %v1256_v59, %v2596_v42  ;;  %v2617_v19 = vpop.f32.mrb[4].mxu1  ;;  %v1420_v24 = vand.u32 31, %v1418_v13  ;;  %v2624_v6 = vrot.slane %v2381_v12, %v1023_v56 }
 0x18e   :  { %v2619_v20 = vpop.f32.mrb[5].mxu0  ;;  %v1178_v22 = vxor.u32 2147483648, %v1177_v58  ;;  %v1258_v62 = vadd.s32 %v1257_v57, %v1253_v44  ;;  %v2626_v4 = vpop.f32.mrb[5].mxu1  ;;  %v1377_v49 = vor.u32 %v1376_v16, %v1375_v21  ;;  %v2631_v50 = vrot.slane %v2385_v15, %v1015_v1 }
 0x18f   :  { %v949_v25 = vpop.f32.mrb[6].mxu0  ;;  %v1380_v28 = vshll.u32 %v1379_v18, 23  ;;  %v2636_v30 = vrot.slane %v2385_v15, %v1023_v56  ;;  %v990_v31 = vpop.f32.mrb[6].mxu1  ;;  %v2640_v39 = vand.u32 3, %v1187_v53  ;;  %v1421_v45 = vsub.s32 32, %v1420_v24 }
 0x190   :  { %v950_v35 = vpop.f32.mrb[7].mxu0  ;;  %v1179_v37 = vsel %vm1096_vm13, %v1178_v22, %v1177_v58  ;;  %v1259_v42 = vadd.s32 536870912, %v1258_v62  ;;  %v991_v26 = vpop.f32.mrb[7].mxu1  ;;  %v2645_v32 = vand.u32 3, %v1395_v63  ;;  %v1414_v56 = vor.u32 8388608, %v2605_v47 }
 0x191   :  { %v1182_v1 = vsel %vm2545_vm1, %v2393_v29, %v1179_v37  ;;  %v1381_v27 = vor.u32 4788187, %v1380_v28  ;;  %v2650_v46 = vshrl.u32 %v1418_v13, 5  ;;  %v1424_v43 = vshrl.u32 %v2298_v8, %v1421_v45 }
 0x192   :  { %2164 = vcosq.f32 %v1182_v1  ;;  %v2648_v52 = vshrl.u32 %v1259_v42, 30  ;;  %v1384_v5 = vcvt.s32.f32 %v1377_v49  ;;  %v1427_v53 = vshrl.u32 %v2299_v11, %v1421_v45 }
 0x193   :  { %2166 = vsinq.f32 %v1182_v1  ;;  %v1382_v51 = vand.u32 2147483647, %v1381_v27  ;;  %v1423_v41 = vshll.u32 %v2297_v3, %v1420_v24  ;;  %v1429_v7 = vshll.u32 %v2299_v11, %v1420_v24 }
 0x194   :  { %v1261_v48 = vshll.u32 %v2648_v52, 30  ;;  %v1430_v47 = vshrl.u32 %v2300_v14, %v1421_v45  ;;  %v1426_v58 = vshll.u32 %v2298_v8, %v1420_v24  ;;  %v1432_v63 = vshll.u32 %v2300_v14, %v1420_v24 }
 0x195   :  { %v1385_v59 = vmul.f32 %v1384_v5, %v1382_v51  ;;  %v1433_v44 = vshrl.u32 %v2301_v17, %v1421_v45  ;;  %vm1193_vm9 = vcmp.eq.s32.totalorder %v2640_v39, 2  ;;  %v1425_v21 = vor.u32 %v1424_v43, %v1423_v41 }
 0x196   :  { %v2662_v13 = vsub.s32 %v1258_v62, %v1261_v48  ;;  %v1431_v16 = vor.u32 %v1430_v47, %v1429_v7  ;;  %v2664_v18 = vshll.u32 %v1414_v56, 8  ;;  %vm1190_vm10 = vcmp.eq.s32.totalorder %v2640_v39, 0 }
 0x197   :  { %v1386_v57 = vxor.u32 2147483648, %v1385_v59  ;;  %v1428_v22 = vor.u32 %v1427_v53, %v1426_v58  ;;  %v1434_v25 = vor.u32 %v1433_v44, %v1432_v63  ;;  %v1436_v49 = vshrl.u32 %v2302_v23, %v1421_v45 }
 0x198   :  { %vm1189_vm11 = vcmp.lt.s32.totalorder %v2640_v39, 2  ;;  %v1254_v28 = vadd.s32 %v2595_v40, %v2592_v0  ;;  %v1264_v31 = vsub.s32 0, %v2662_v13  ;;  %v1435_v62 = vshll.u32 %v2301_v17, %v1420_v24 }
 0x199   :  { %v1041_v35 = vmul.f32 %v2512_v60, %v945_v38  ;;  %vm1186_vm12 = vweird.f32 %v2393_v29  ;;  %v1387_v37 = vsel %vm1304_vm14, %v1386_v57, %v1385_v59  ;;  %v1422_v42 = vshrl.u32 %v2297_v3, %v1421_v45 }
 0x19a   :  { %vm1438_vm13 = vcmp.lt.s32.totalorder %v2650_v46, 1  ;;  %vm1441_vm15 = vcmp.lt.s32.totalorder %v2650_v46, 4  ;;  %v1390_v0 = vsel %vm2559_vm5, %v2396_v33, %v1387_v37  ;;  %v2093_v40 = vmin.u32 %v1264_v31, %v2662_v13 }
 0x19b   :  { %v1437_v24 = vor.u32 %v1436_v49, %v1435_v62  ;;  %v1443_v60 = vsel %vm1441_vm15, %v1431_v16, 2102212464  ;;  %2168 = vcosq.f32 %v1390_v0  ;;  %vm1439_vm0 = vcmp.lt.s32.totalorder %v2650_v46, 2 }
 0x19c   :  { %v1446_v38 = vsel %vm1438_vm13, %v1425_v21, %v1428_v22  ;;  %v1447_v45 = vsel %vm1441_vm15, %v1434_v25, 920167782  ;;  %v2165_v26 = vpop.eup %2164  ;;  %2170 = vsinq.f32 %v1390_v0  ;;  %vm1200_vm14 = vcmp.lt.s32.totalorder %v2398_v34, 0 }
 0x19d   :  { %v1266_v36 = vclz %v2093_v40  ;;  %vm1440_vm1 = vcmp.lt.s32.totalorder %v2650_v46, 3  ;;  %v1442_v1 = vsel %vm1438_vm13, %v1422_v42, %v1425_v21  ;;  %v2167_v27 = vpop.eup %2166  ;;  %v1194_v56 = vxor.u32 2147483648, %v2165_v26 }
 0x19e   :  { %v1444_v43 = vsel %vm1440_vm1, %v1428_v22, %v1443_v60  ;;  %v1448_v51 = vsel %vm1440_vm1, %v1431_v16, %v1447_v45  ;;  %v1450_v5 = vsel %vm1438_vm13, %v1428_v22, %v1431_v16  ;;  %v1191_v53 = vxor.u32 2147483648, %v2167_v27 }
 0x19f   :  { %v2094_v48 = vadd.s32 4294967294, %v1266_v36  ;;  %v1449_v41 = vsel %vm1439_vm0, %v1446_v38, %v1448_v51  ;;  %v1451_v7 = vsel %vm1441_vm15, %v1437_v24, 1326507024  ;;  %v1195_v47 = vsel %vm1193_vm9, %v1194_v56, %v2167_v27 }
 0x1a0   :  { %v1452_v59 = vsel %vm1440_vm1, %v1434_v25, %v1451_v7  ;;  %v2704_v58 = vmul.u32.u64.low %v2664_v18, %v1449_v41  ;;  %v2705_v63 = vmul.u32.u64.high %v2664_v18, %v1449_v41, %v2704_v58  ;;  %v1192_v44 = vsel %vm1190_vm10, %v2165_v26, %v1191_v53 }
 0x1a1   :  { %vm2095_vm2 = vcmp.lt.s32.totalorder %v2094_v48, 0  ;;  %v1284_v21 = vsub.s32 4, %v2648_v52  ;;  %v1453_v16 = vsel %vm1439_vm0, %v1450_v5, %v1452_v59  ;;  %v1196_v57 = vsel %vm1189_vm11, %v1192_v44, %v1195_v47 }
 0x1a2   :  { %v1269_v22 = vsel %vm2095_vm2, 0, %v2094_v48  ;;  %v2716_v25 = vmul.u32.u64.low %v2664_v18, %v1453_v16  ;;  %v2717_v49 = vmul.u32.u64.high %v2664_v18, %v1453_v16, %v2716_v25  ;;  %v1197_v31 = vsel %vm1186_vm12, nan, %v1196_v57 }
 0x1a3   :  { %vm1394_vm3 = vweird.f32 %v2396_v33  ;;  %v1270_v62 = vsub.s32 32, %v1269_v22  ;;  %v1274_v37 = vsub.s32 4294967266, %v1269_v22  ;;  %v1445_v42 = vsel %vm1439_vm0, %v1442_v1, %v1444_v43 }
 0x1a4   :  { %v1928_v0 = vmul.f32 %v2500_v55, %v1197_v31  ;;  %vm2727_vm4 = vcmp.le.f32.partialorder %v1198_v54, 0.7853982  ;;  %v1464_v40 = vadd.s32 1, %v2705_v63  ;;  %v2733_v29 = vadd.f32 %v2631_v50, %v1041_v35 }
 0x1a5   :  { %vm1401_vm5 = vcmp.eq.s32.totalorder %v2645_v32, 2  ;;  %v1271_v24 = vshll.u32 %v2662_v13, %v1269_v22  ;;  %v1272_v60 = vshrl.u32 %v1254_v28, %v1270_v62  ;;  %v1275_v46 = vadd.s32 127, %v1274_v37  ;;  %v2169_v38 = vpop.eup %2168 }
 0x1a6   :  { %1936 = vst [vmem:[#allocation9] sm:$0xff] %v1928_v0  ;;  %v1285_v54 = vsel %vm1200_vm14, %v1284_v21, %v2648_v52  ;;  %v1461_v45 = vmul.u32 %v2664_v18, %v1445_v42  ;;  %vm1463_vm6 = vc.u32 %v2717_v49, %v2704_v58  ;;  %v1043_v50 = vmul.f32 %v2624_v6, %v2617_v19  ;;  %v2171_v35 = vpop.eup %2170 }
 0x1a7   :  { %v1402_v26 = vxor.u32 2147483648, %v2169_v38  ;;  %v1273_v36 = vor.u32 %v1272_v60, %v1271_v24  ;;  %v1276_v13 = vshll.u32 %v1275_v46, 23  ;;  %v1465_v28 = vsel %vm1463_vm6, %v1464_v40, %v2705_v63 }
 0x1a8   :  { %v1399_v1 = vxor.u32 2147483648, %v2171_v35  ;;  %v1466_v27 = vadd.s32 %v1465_v28, %v1461_v45  ;;  %v1510_v56 = vand.u32 2147483647, %v2733_v29  ;;  %v1513_v52 = vand.u32 2139095040, %v2733_v29 }
 0x1a9   :  { %vm1397_vm7 = vcmp.lt.s32.totalorder %v2645_v32, 2  ;;  %vm1398_vm8 = vcmp.eq.s32.totalorder %v2645_v32, 0  ;;  %v1403_v18 = vsel %vm1401_vm5, %v1402_v26, %v2171_v35  ;;  %v1277_v19 = vor.u32 4788187, %v1276_v13 }
 0x1aa   :  { %v1400_v6 = vsel %vm1398_vm8, %v2169_v38, %v1399_v1  ;;  %v1287_v43 = vsel %vm2727_vm4, 0, %v1285_v54  ;;  %v1467_v51 = vadd.s32 536870912, %v1466_v27  ;;  %v1514_v5 = vshrl.u32 %v1513_v52, 23 }
 0x1ab   :  { %v1404_v53 = vsel %vm1397_vm7, %v1400_v6, %v1403_v18  ;;  %v1278_v48 = vand.u32 2147483647, %v1277_v19  ;;  %v1280_v41 = vcvt.s32.f32 %v1273_v36  ;;  %v2755_v7 = vadd.f32 %v2636_v30, %v1043_v50 }
 0x1ac   :  { %v1405_v47 = vsel %vm1394_vm3, nan, %v1404_v53  ;;  %v2759_v59 = vshrl.u32 %v1467_v51, 30  ;;  %v2104_v32 = vadd.s32 4294967169, %v1514_v5  ;;  %v1517_v63 = vand.u32 8388607, %v1510_v56 }
 0x1ad   :  { %v1930_v44 = vmul.f32 %v2500_v55, %v1405_v47  ;;  %v1281_v21 = vmul.f32 %v1280_v41, %v1278_v48  ;;  %v1291_v25 = vadd.s32 3, %v1287_v43  ;;  %v1721_v30 = vand.u32 2139095040, %v2755_v7 }
 0x1ae   :  { %v1469_v16 = vshll.u32 %v2759_v59, 30  ;;  %v1520_v57 = vadd.s32 1, %v2104_v32  ;;  %v1020_v33 = vrot.slane %v2381_v12, %v1019_v2  ;;  %v1518_v62 = vor.u32 8388608, %v1517_v63 }
 0x1af   :  { %1938 = vst [vmem:[#allocation9 + $0x10] sm:$0xff] %v1930_v44  ;;  %v1282_v22 = vxor.u32 2147483648, %v1281_v21  ;;  %v1718_v0 = vand.u32 2147483647, %v2755_v7  ;;  %v1722_v60 = vshrl.u32 %v1721_v30, 23  ;;  %v2781_v12 = vrot.slane %v2385_v15, %v1019_v2 }
 0x1b0   :  { %v2769_v31 = vsub.s32 %v1466_v27, %v1469_v16  ;;  %vm1521_vm9 = vcmp.gt.s32.totalorder %v1520_v57, 0  ;;  %v2783_v46 = vand.u32 3, %v1291_v25  ;;  %v2786_v54 = vmul.f32 %v1020_v33, %v2619_v20 }
 0x1b1   :  { %v1283_v37 = vsel %vm1200_vm14, %v1282_v22, %v1281_v21  ;;  %v1522_v42 = vsel %vm1521_vm9, %v1520_v57, 0  ;;  %v1462_v39 = vadd.s32 %v2704_v58, %v2717_v49  ;;  %v2791_v50 = vshll.u32 %v1518_v62, 8 }
 0x1b2   :  { %v1286_v40 = vsel %vm2727_vm4, %v2398_v34, %v1283_v37  ;;  %v1472_v24 = vsub.s32 0, %v2769_v31  ;;  %v1524_v38 = vand.u32 31, %v1522_v42  ;;  %v1492_v35 = vsub.s32 4, %v2759_v59 }
 0x1b3   :  { %2172 = vcosq.f32 %v1286_v40  ;;  %v2794_v26 = vshrl.u32 %v1522_v42, 5  ;;  %v2798_v2 = vand.u32 8388607, %v1718_v0  ;;  %v2112_v28 = vadd.s32 4294967169, %v1722_v60 }
 0x1b4   :  { %2174 = vsinq.f32 %v1286_v40  ;;  %v2101_v45 = vmin.u32 %v1472_v24, %v2769_v31  ;;  %v1525_v15 = vsub.s32 32, %v1524_v38  ;;  %v1527_v20 = vshll.u32 %v2297_v3, %v1524_v38 }
 0x1b5   :  { %v1530_v13 = vshll.u32 %v2298_v8, %v1524_v38  ;;  %vm1297_vm10 = vcmp.eq.s32.totalorder %v2783_v46, 2  ;;  %v1533_v1 = vshll.u32 %v2299_v11, %v1524_v38  ;;  %vm1294_vm11 = vcmp.eq.s32.totalorder %v2783_v46, 0 }
 0x1b6   :  { %v1474_v36 = vclz %v2101_v45  ;;  %v1528_v58 = vshrl.u32 %v2298_v8, %v1525_v15  ;;  %v1531_v49 = vshrl.u32 %v2299_v11, %v1525_v15  ;;  %v1534_v27 = vshrl.u32 %v2300_v14, %v1525_v15 }
 0x1b7   :  { %v1536_v18 = vshll.u32 %v2300_v14, %v1524_v38  ;;  %v1537_v19 = vshrl.u32 %v2301_v17, %v1525_v15  ;;  %v1539_v6 = vshll.u32 %v2301_v17, %v1524_v38  ;;  %vm1293_vm12 = vcmp.lt.s32.totalorder %v2783_v46, 2 }
 0x1b8   :  { %v2102_v52 = vadd.s32 4294967294, %v1474_v36  ;;  %vm1408_vm13 = vcmp.lt.s32.totalorder %v2412_v61, 0  ;;  %v1529_v43 = vor.u32 %v1528_v58, %v1527_v20  ;;  %v1532_v51 = vor.u32 %v1531_v49, %v1530_v13 }
 0x1b9   :  { %v1535_v5 = vor.u32 %v1534_v27, %v1533_v1  ;;  %v1540_v53 = vshrl.u32 %v2302_v23, %v1525_v15  ;;  %vm1290_vm15 = vweird.f32 %v2398_v34  ;;  %v1526_v48 = vshrl.u32 %v2297_v3, %v1525_v15 }
 0x1ba   :  { %vm2103_vm0 = vcmp.lt.s32.totalorder %v2102_v52, 0  ;;  %v1538_v41 = vor.u32 %v1537_v19, %v1536_v18  ;;  %vm1542_vm14 = vcmp.lt.s32.totalorder %v2794_v26, 1  ;;  %vm1543_vm1 = vcmp.lt.s32.totalorder %v2794_v26, 2 }
 0x1bb   :  { %v1477_v47 = vsel %vm2103_vm0, 0, %v2102_v52  ;;  %v1541_v32 = vor.u32 %v1540_v53, %v1539_v6  ;;  %vm1545_vm2 = vcmp.lt.s32.totalorder %v2794_v26, 4  ;;  %vm2821_vm3 = vcmp.le.f32.partialorder %v1406_v9, 0.7853982 }
 0x1bc   :  { %v1478_v44 = vsub.s32 32, %v1477_v47  ;;  %v1482_v21 = vsub.s32 4294967266, %v1477_v47  ;;  %vm1544_vm4 = vcmp.lt.s32.totalorder %v2794_v26, 3  ;;  %v1547_v16 = vsel %vm1545_vm2, %v1535_v5, 2102212464 }
 0x1bd   :  { %v2173_v57 = vpop.eup %2172  ;;  %v1479_v22 = vshll.u32 %v2769_v31, %v1477_v47  ;;  %v1546_v25 = vsel %vm1542_vm14, %v1526_v48, %v1529_v43  ;;  %v1550_v30 = vsel %vm1542_vm14, %v1529_v43, %v1532_v51  ;;  %v1551_v9 = vsel %vm1545_vm2, %v1538_v41, 920167782 }
 0x1be   :  { %v2175_v33 = vpop.eup %2174  ;;  %v1298_v62 = vxor.u32 2147483648, %v2173_v57  ;;  %v1480_v37 = vshrl.u32 %v1462_v39, %v1478_v44  ;;  %v1483_v42 = vadd.s32 127, %v1482_v21  ;;  %v1548_v40 = vsel %vm1544_vm4, %v1532_v51, %v1547_v16 }
 0x1bf   :  { %v1295_v24 = vxor.u32 2147483648, %v2175_v33  ;;  %v1552_v31 = vsel %vm1544_vm4, %v1535_v5, %v1551_v9  ;;  %v1554_v60 = vsel %vm1542_vm14, %v1532_v51, %v1535_v5  ;;  %v1555_v38 = vsel %vm1545_vm2, %v1541_v32, 1326507024 }
 0x1c0   :  { %v1299_v45 = vsel %vm1297_vm10, %v1298_v62, %v2175_v33  ;;  %v1481_v15 = vor.u32 %v1480_v37, %v1479_v22  ;;  %v1484_v36 = vshll.u32 %v1483_v42, 23  ;;  %v1553_v39 = vsel %vm1543_vm1, %v1550_v30, %v1552_v31 }
 0x1c1   :  { %v1296_v20 = vsel %vm1294_vm11, %v2173_v57, %v1295_v24  ;;  %v1556_v13 = vsel %vm1544_vm4, %v1538_v41, %v1555_v38  ;;  %v2852_v58 = vmul.u32.u64.low %v2791_v50, %v1553_v39  ;;  %v2853_v49 = vmul.u32.u64.high %v2791_v50, %v1553_v39, %v2852_v58 }
 0x1c2   :  { %v1300_v1 = vsel %vm1293_vm12, %v1296_v20, %v1299_v45  ;;  %v1485_v27 = vor.u32 4788187, %v1484_v36  ;;  %v1493_v52 = vsel %vm1408_vm13, %v1492_v35, %v2759_v59  ;;  %v1557_v18 = vsel %vm1543_vm1, %v1554_v60, %v1556_v13  ;;  %v2196_v20 = vld [vmem:[#allocation8] ss:$2 sm:$0xff] }
 0x1c3   :  { %v1301_v19 = vsel %vm1290_vm15, nan, %v1300_v1  ;;  %v2866_v6 = vmul.u32.u64.low %v2791_v50, %v1557_v18  ;;  %v2867_v43 = vmul.u32.u64.high %v2791_v50, %v1557_v18, %v2866_v6  ;;  %v1728_v51 = vadd.s32 1, %v2112_v28 }
 0x1c4   :  { %v1929_v5 = vmul.f32 %v2500_v55, %v1301_v19  ;;  %v1486_v46 = vand.u32 2147483647, %v1485_v27  ;;  %v1488_v53 = vcvt.s32.f32 %v1481_v15  ;;  %v1549_v48 = vsel %vm1543_vm1, %v1546_v25, %v1548_v40  ;;  %v2197_v27 = vld [vmem:[#allocation8 + $0x1] ss:$2 sm:$0xff] }
 0x1c5   :  { %v1495_v59 = vsel %vm2821_vm3, 0, %v1493_v52  ;;  %v1568_v35 = vadd.s32 1, %v2853_v49  ;;  %vm1729_vm5 = vcmp.gt.s32.totalorder %v1728_v51, 0  ;;  %v2877_v34 = vadd.f32 %v2781_v12, %v2786_v54 }
 0x1c6   :  { %1937 = vst [vmem:[#allocation9 + $0x8] sm:$0xff] %v1929_v5  ;;  %v1489_v41 = vmul.f32 %v1488_v53, %v1486_v46  ;;  %v1730_v28 = vsel %vm1729_vm5, %v1728_v51, 0  ;;  %v1565_v47 = vmul.u32 %v2791_v50, %v1549_v48  ;;  %vm1567_vm6 = vc.u32 %v2867_v43, %v2852_v58 }
 0x1c7   :  { %v1732_v26 = vand.u32 31, %v1730_v28  ;;  %v1027_v32 = vsub.s32 7, %v2378_v10  ;;  %v1499_v21 = vadd.s32 3, %v1495_v59  ;;  %v1569_v16 = vsel %vm1567_vm6, %v1568_v35, %v2853_v49 }
 0x1c8   :  { %v1490_v44 = vxor.u32 2147483648, %v1489_v41  ;;  %v1726_v57 = vor.u32 8388608, %v2798_v2  ;;  %v1570_v22 = vadd.s32 %v1569_v16, %v1565_v47  ;;  %v2885_v12 = vshrl.u32 %v1730_v28, 5 }
 0x1c9   :  { %v1733_v54 = vsub.s32 32, %v1732_v26  ;;  %v1617_v25 = vand.u32 2139095040, %v2877_v34  ;;  %v1735_v30 = vshll.u32 %v2297_v3, %v1732_v26  ;;  %v1738_v9 = vshll.u32 %v2298_v8, %v1732_v26 }
 0x1ca   :  { %v1491_v50 = vsel %vm1408_vm13, %v1490_v44, %v1489_v41  ;;  %v1741_v10 = vshll.u32 %v2299_v11, %v1732_v26  ;;  %v1571_v2 = vadd.s32 536870912, %v1570_v22  ;;  %v1744_v37 = vshll.u32 %v2300_v14, %v1732_v26 }
 0x1cb   :  { %v1494_v33 = vsel %vm2821_vm3, %v2412_v61, %v1491_v50  ;;  %v1736_v62 = vshrl.u32 %v2298_v8, %v1733_v54  ;;  %v1739_v42 = vshrl.u32 %v2299_v11, %v1733_v54  ;;  %v1742_v40 = vshrl.u32 %v2300_v14, %v1733_v54 }
 0x1cc   :  { %2176 = vcosq.f32 %v1494_v33  ;;  %v1745_v24 = vshrl.u32 %v2301_v17, %v1733_v54  ;;  %v2901_v31 = vshrl.u32 %v1571_v2, 30  ;;  %v1748_v38 = vshrl.u32 %v2302_v23, %v1733_v54 }
 0x1cd   :  { %2178 = vsinq.f32 %v1494_v33  ;;  %v1737_v60 = vor.u32 %v1736_v62, %v1735_v30  ;;  %v1740_v63 = vor.u32 %v1739_v42, %v1738_v9  ;;  %v1743_v45 = vor.u32 %v1742_v40, %v1741_v10 }
 0x1ce   :  { %v1746_v15 = vor.u32 %v1745_v24, %v1744_v37  ;;  %v1747_v36 = vshll.u32 %v2301_v17, %v1732_v26  ;;  %v1573_v39 = vshll.u32 %v2901_v31, 30  ;;  %vm1750_vm7 = vcmp.lt.s32.totalorder %v2885_v12, 1 }
 0x1cf   :  { %v1028_v13 = vrot.slane %v2196_v20, %v1027_v32  ;;  %vm1753_vm8 = vcmp.lt.s32.totalorder %v2885_v12, 4  ;;  %v1758_v1 = vsel %vm1750_vm7, %v1737_v60, %v1740_v63  ;;  %v1077_v52 = vrot.slane %v2197_v27, %v1027_v32 }
 0x1d0   :  { %v1749_v49 = vor.u32 %v1748_v38, %v1747_v36  ;;  %v2910_v18 = vsub.s32 %v1570_v22, %v1573_v39  ;;  %vm1752_vm9 = vcmp.lt.s32.totalorder %v2885_v12, 3  ;;  %v1759_v19 = vsel %vm1753_vm8, %v1746_v15, 920167782 }
 0x1d1   :  { %v1618_v6 = vshrl.u32 %v1617_v25, 23  ;;  %v1500_v51 = vand.u32 3, %v1499_v21  ;;  %vm1751_vm10 = vcmp.lt.s32.totalorder %v2885_v12, 2  ;;  %v1760_v5 = vsel %vm1752_vm9, %v1743_v45, %v1759_v19 }
 0x1d2   :  { %v1766_v46 = vshll.u32 %v1726_v57, 8  ;;  %vm1498_vm11 = vweird.f32 %v2412_v61  ;;  %v1576_v53 = vsub.s32 0, %v2910_v18  ;;  %v1761_v48 = vsel %vm1751_vm10, %v1758_v1, %v1760_v5 }
 0x1d3   :  { %v1762_v59 = vsel %vm1750_vm7, %v1740_v63, %v1743_v45  ;;  %v1044_v35 = vmul.f32 %v1028_v13, %v2626_v4  ;;  %v1755_v41 = vsel %vm1753_vm8, %v1743_v45, 2102212464  ;;  %v1763_v28 = vsel %vm1753_vm8, %v1749_v49, 1326507024 }
 0x1d4   :  { %v2929_v47 = vmul.u32.u64.low %v1766_v46, %v1761_v48  ;;  %v2930_v26 = vmul.u32.u64.high %v1766_v46, %v1761_v48, %v2929_v47  ;;  %v2105_v32 = vmin.u32 %v1576_v53, %v2910_v18  ;;  %v1734_v44 = vshrl.u32 %v2297_v3, %v1733_v54 }
 0x1d5   :  { %v1764_v21 = vsel %vm1752_vm9, %v1746_v15, %v1763_v28  ;;  %v2108_v16 = vadd.s32 4294967169, %v1618_v6  ;;  %vm1501_vm12 = vcmp.lt.s32.totalorder %v1500_v51, 2  ;;  %vm1512_vm13 = vcmp.lt.s32.totalorder %v2733_v29, 0 }
 0x1d6   :  { %v2177_v57 = vpop.eup %2176  ;;  %v1765_v4 = vsel %vm1751_vm10, %v1762_v59, %v1764_v21  ;;  %v1614_v22 = vand.u32 2147483647, %v2877_v34  ;;  %v1578_v30 = vclz %v2105_v32  ;;  %v1754_v9 = vsel %vm1750_vm7, %v1734_v44, %v1737_v60 }
 0x1d7   :  { %v2179_v25 = vpop.eup %2178  ;;  %v1506_v50 = vxor.u32 2147483648, %v2177_v57  ;;  %v1756_v54 = vsel %vm1752_vm9, %v1740_v63, %v1755_v41  ;;  %vm1505_vm15 = vcmp.eq.s32.totalorder %v1500_v51, 2  ;;  %vm1502_vm0 = vcmp.eq.s32.totalorder %v1500_v51, 0 }
 0x1d8   :  { %v1503_v10 = vxor.u32 2147483648, %v2179_v25  ;;  %v2945_v33 = vmul.u32.u64.low %v1766_v46, %v1765_v4  ;;  %v2946_v2 = vmul.u32.u64.high %v1766_v46, %v1765_v4, %v2945_v33  ;;  %v2106_v37 = vadd.s32 4294967294, %v1578_v30 }
 0x1d9   :  { %v1507_v62 = vsel %vm1505_vm15, %v1506_v50, %v2179_v25  ;;  %v1624_v42 = vadd.s32 1, %v2108_v16  ;;  %v1596_v24 = vsub.s32 4, %v2901_v31  ;;  %v1757_v38 = vsel %vm1751_vm10, %v1754_v9, %v1756_v54 }
 0x1da   :  { %v1504_v40 = vsel %vm1502_vm0, %v2177_v57, %v1503_v10  ;;  %v1776_v60 = vadd.s32 1, %v2930_v26  ;;  %vm2107_vm14 = vcmp.lt.s32.totalorder %v2106_v37, 0  ;;  %v1621_v63 = vand.u32 8388607, %v1614_v22 }
 0x1db   :  { %v1508_v45 = vsel %vm1501_vm12, %v1504_v40, %v1507_v62  ;;  %vm1625_vm1 = vcmp.gt.s32.totalorder %v1624_v42, 0  ;;  %v1566_v36 = vadd.s32 %v2852_v58, %v2867_v43  ;;  %v1581_v39 = vsel %vm2107_vm14, 0, %v2106_v37 }
 0x1dc   :  { %v1509_v15 = vsel %vm1498_vm11, nan, %v1508_v45  ;;  %vm1775_vm2 = vc.u32 %v2946_v2, %v2929_v47  ;;  %v1582_v20 = vsub.s32 32, %v1581_v39  ;;  %v1586_v13 = vsub.s32 4294967266, %v1581_v39 }
 0x1dd   :  { %v1931_v12 = vmul.f32 %v2500_v55, %v1509_v15  ;;  %v1773_v49 = vmul.u32 %v1766_v46, %v1757_v38  ;;  %v1597_v1 = vsel %vm1512_vm13, %v1596_v24, %v2901_v31  ;;  %v1777_v27 = vsel %vm1775_vm2, %v1776_v60, %v2930_v26 }
 0x1de   :  { %v1626_v61 = vsel %vm1625_vm1, %v1624_v42, 0  ;;  %v2966_v19 = vadd.f32 %v1077_v52, %v1044_v35  ;;  %v1583_v58 = vshll.u32 %v2910_v18, %v1581_v39  ;;  %v1584_v43 = vshrl.u32 %v1566_v36, %v1582_v20 }
 0x1df   :  { %1939 = vst [vmem:[#allocation9 + $0x18] sm:$0xff] %v1931_v12  ;;  %v1587_v6 = vadd.s32 127, %v1586_v13  ;;  %v1778_v51 = vadd.s32 %v1777_v27, %v1773_v49  ;;  %v1628_v5 = vand.u32 31, %v1626_v61  ;;  %vm2971_vm3 = vcmp.le.f32.partialorder %v1510_v56, 0.7853982 }
 0x1e0   :  { %v1585_v53 = vor.u32 %v1584_v43, %v1583_v58  ;;  %v1599_v52 = vsel %vm2971_vm3, 0, %v1597_v1  ;;  %v1622_v59 = vor.u32 8388608, %v1621_v63  ;;  %v1825_v18 = vand.u32 2139095040, %v2966_v19 }
 0x1e1   :  { %v1588_v31 = vshll.u32 %v1587_v6, 23  ;;  %v1779_v48 = vadd.s32 536870912, %v1778_v51  ;;  %v1629_v35 = vsub.s32 32, %v1628_v5  ;;  %v1627_v26 = vshrl.u32 %v1626_v61, 5 }
 0x1e2   :  { %v1631_v32 = vshll.u32 %v2297_v3, %v1628_v5  ;;  %v1637_v21 = vshll.u32 %v2299_v11, %v1628_v5  ;;  %v1592_v4 = vcvt.s32.f32 %v1585_v53  ;;  %v1634_v30 = vshll.u32 %v2298_v8, %v1628_v5 }
 0x1e3   :  { %v1589_v41 = vor.u32 4788187, %v1588_v31  ;;  %v2978_v28 = vshrl.u32 %v1779_v48, 30  ;;  %v1632_v56 = vshrl.u32 %v2298_v8, %v1629_v35  ;;  %v1635_v44 = vshrl.u32 %v2299_v11, %v1629_v35 }
 0x1e4   :  { %v1638_v16 = vshrl.u32 %v2300_v14, %v1629_v35  ;;  %v1641_v50 = vshrl.u32 %v2301_v17, %v1629_v35  ;;  %v1640_v54 = vshll.u32 %v2300_v14, %v1628_v5  ;;  %v1826_v10 = vshrl.u32 %v1825_v18, 23 }
 0x1e5   :  { %v1590_v57 = vand.u32 2147483647, %v1589_v41  ;;  %v1781_v25 = vshll.u32 %v2978_v28, 30  ;;  %v1603_v62 = vadd.s32 3, %v1599_v52  ;;  %v1633_v42 = vor.u32 %v1632_v56, %v1631_v32 }
 0x1e6   :  { %v1639_v9 = vor.u32 %v1638_v16, %v1637_v21  ;;  %v1636_v40 = vor.u32 %v1635_v44, %v1634_v30  ;;  %v1642_v24 = vor.u32 %v1641_v50, %v1640_v54  ;;  %v1643_v38 = vshll.u32 %v2301_v17, %v1628_v5 }
 0x1e7   :  { %v1593_v33 = vmul.f32 %v1592_v4, %v1590_v57  ;;  %v2989_v37 = vsub.s32 %v1778_v51, %v1781_v25  ;;  %v1644_v60 = vshrl.u32 %v2302_v23, %v1629_v35  ;;  %vm1649_vm4 = vcmp.lt.s32.totalorder %v1627_v26, 4 }
 0x1e8   :  { %v1662_v15 = vshll.u32 %v1622_v59, 8  ;;  %v1630_v36 = vshrl.u32 %v2297_v3, %v1629_v35  ;;  %v1651_v12 = vsel %vm1649_vm4, %v1639_v9, 2102212464  ;;  %v2116_v20 = vadd.s32 4294967169, %v1826_v10 }
 0x1e9   :  { %v1594_v45 = vxor.u32 2147483648, %v1593_v33  ;;  %v1784_v63 = vsub.s32 0, %v2989_v37  ;;  %v1645_v39 = vor.u32 %v1644_v60, %v1643_v38  ;;  %vm1646_vm5 = vcmp.lt.s32.totalorder %v1627_v26, 1 }
 0x1ea   :  { %vm1648_vm6 = vcmp.lt.s32.totalorder %v1627_v26, 3  ;;  %v1650_v27 = vsel %vm1646_vm5, %v1630_v36, %v1633_v42  ;;  %v1654_v61 = vsel %vm1646_vm5, %v1633_v42, %v1636_v40  ;;  %v1655_v58 = vsel %vm1649_vm4, %v1642_v24, 920167782 }
 0x1eb   :  { %v1595_v13 = vsel %vm1512_vm13, %v1594_v45, %v1593_v33  ;;  %v2113_v49 = vmin.u32 %v1784_v63, %v2989_v37  ;;  %v1652_v6 = vsel %vm1648_vm6, %v1636_v40, %v1651_v12  ;;  %v1658_v51 = vsel %vm1646_vm5, %v1636_v40, %v1639_v9 }
 0x1ec   :  { %v1598_v1 = vsel %vm2971_vm3, %v2733_v29, %v1595_v13  ;;  %vm1647_vm7 = vcmp.lt.s32.totalorder %v1627_v26, 2  ;;  %v1656_v5 = vsel %vm1648_vm6, %v1639_v9, %v1655_v58  ;;  %v1659_v53 = vsel %vm1649_vm4, %v1645_v39, 1326507024 }
 0x1ed   :  { %2180 = vcosq.f32 %v1598_v1  ;;  %v1786_v43 = vclz %v2113_v49  ;;  %vm1720_vm8 = vcmp.lt.s32.totalorder %v2755_v7, 0  ;;  %v1657_v46 = vsel %vm1647_vm7, %v1654_v61, %v1656_v5 }
 0x1ee   :  { %2182 = vsinq.f32 %v1598_v1  ;;  %v1660_v48 = vsel %vm1648_vm6, %v1642_v24, %v1659_v53  ;;  %v1653_v52 = vsel %vm1647_vm7, %v1650_v27, %v1652_v6  ;;  %v1832_v56 = vadd.s32 1, %v2116_v20 }
 0x1ef   :  { %v2114_v31 = vadd.s32 4294967294, %v1786_v43  ;;  %v1661_v59 = vsel %vm1647_vm7, %v1658_v51, %v1660_v48  ;;  %v3008_v35 = vmul.u32.u64.low %v1662_v15, %v1657_v46  ;;  %v3009_v18 = vmul.u32.u64.high %v1662_v15, %v1657_v46, %v3008_v35 }
 0x1f0   :  { %v3012_v41 = vmul.u32.u64.low %v1662_v15, %v1661_v59  ;;  %v3013_v32 = vmul.u32.u64.high %v1662_v15, %v1661_v59, %v3012_v41  ;;  %v1604_v44 = vand.u32 3, %v1603_v62  ;;  %v1804_v16 = vsub.s32 4, %v2978_v28 }
 0x1f1   :  { %vm2115_vm9 = vcmp.lt.s32.totalorder %v2114_v31, 0  ;;  %v1822_v57 = vand.u32 2147483647, %v2966_v19  ;;  %v1774_v26 = vadd.s32 %v2929_v47, %v2946_v2  ;;  %vm1833_vm10 = vcmp.gt.s32.totalorder %v1832_v56, 0 }
 0x1f2   :  { %v1789_v21 = vsel %vm2115_vm9, 0, %v2114_v31  ;;  %vm1602_vm11 = vweird.f32 %v2733_v29  ;;  %vm3022_vm12 = vcmp.le.f32.partialorder %v1718_v0, 0.7853982  ;;  %v1669_v30 = vmul.u32 %v1662_v15, %v1653_v52 }
 0x1f3   :  { %v1790_v4 = vsub.s32 32, %v1789_v21  ;;  %v1794_v25 = vsub.s32 4294967266, %v1789_v21  ;;  %v1672_v9 = vadd.s32 1, %v3009_v18  ;;  %v1834_v54 = vsel %vm1833_vm10, %v1832_v56, 0 }
 0x1f4   :  { %v1791_v10 = vshll.u32 %v2989_v37, %v1789_v21  ;;  %vm1671_vm13 = vc.u32 %v3013_v32, %v3008_v35  ;;  %v1805_v47 = vsel %vm1720_vm8, %v1804_v16, %v2978_v28  ;;  %v1829_v2 = vand.u32 8388607, %v1822_v57 }
 0x1f5   :  { %v1792_v33 = vshrl.u32 %v1774_v26, %v1790_v4  ;;  %v1795_v62 = vadd.s32 127, %v1794_v25  ;;  %v1673_v0 = vsel %vm1671_vm13, %v1672_v9, %v3009_v18  ;;  %v1836_v42 = vand.u32 31, %v1834_v54 }
 0x1f6   :  { %vm1605_vm15 = vcmp.lt.s32.totalorder %v1604_v44, 2  ;;  %v1674_v37 = vadd.s32 %v1673_v0, %v1669_v30  ;;  %vm1606_vm0 = vcmp.eq.s32.totalorder %v1604_v44, 0  ;;  %vm1609_vm14 = vcmp.eq.s32.totalorder %v1604_v44, 2 }
 0x1f7   :  { %v2181_v40 = vpop.eup %2180  ;;  %v1793_v24 = vor.u32 %v1792_v33, %v1791_v10  ;;  %v1796_v38 = vshll.u32 %v1795_v62, 23  ;;  %v1837_v63 = vsub.s32 32, %v1836_v42  ;;  %v1807_v28 = vsel %vm3022_vm12, 0, %v1805_v47 }
 0x1f8   :  { %v2183_v60 = vpop.eup %2182  ;;  %v1610_v45 = vxor.u32 2147483648, %v2181_v40  ;;  %v1675_v39 = vadd.s32 536870912, %v1674_v37  ;;  %v1830_v13 = vor.u32 8388608, %v1829_v2  ;;  %v1835_v6 = vshrl.u32 %v1834_v54, 5 }
 0x1f9   :  { %v1607_v15 = vxor.u32 2147483648, %v2183_v60  ;;  %v1797_v36 = vor.u32 4788187, %v1796_v38  ;;  %v1800_v20 = vcvt.s32.f32 %v1793_v24  ;;  %v1840_v49 = vshrl.u32 %v2298_v8, %v1837_v63 }
 0x1fa   :  { %v1611_v12 = vsel %vm1609_vm14, %v1610_v45, %v2183_v60  ;;  %v3039_v61 = vshrl.u32 %v1675_v39, 30  ;;  %v1843_v58 = vshrl.u32 %v2299_v11, %v1837_v63  ;;  %v1839_v51 = vshll.u32 %v2297_v3, %v1836_v42 }
 0x1fb   :  { %v1608_v1 = vsel %vm1606_vm0, %v2181_v40, %v1607_v15  ;;  %v1798_v27 = vand.u32 2147483647, %v1797_v36  ;;  %v1846_v5 = vshrl.u32 %v2300_v14, %v1837_v63  ;;  %v1842_v48 = vshll.u32 %v2298_v8, %v1836_v42 }
 0x1fc   :  { %v1612_v43 = vsel %vm1605_vm15, %v1608_v1, %v1611_v12  ;;  %v1677_v46 = vshll.u32 %v3039_v61, 30  ;;  %v1845_v59 = vshll.u32 %v2299_v11, %v1836_v42  ;;  %v1848_v18 = vshll.u32 %v2300_v14, %v1836_v42 }
 0x1fd   :  { %v1613_v53 = vsel %vm1602_vm11, nan, %v1612_v43  ;;  %v1801_v31 = vmul.f32 %v1800_v20, %v1798_v27  ;;  %v1849_v41 = vshrl.u32 %v2301_v17, %v1837_v63  ;;  %v1841_v21 = vor.u32 %v1840_v49, %v1839_v51 }
 0x1fe   :  { %v1932_v52 = vmul.f32 %v2500_v55, %v1613_v53  ;;  %v1678_v44 = vsub.s32 %v1674_v37, %v1677_v46  ;;  %v1844_v16 = vor.u32 %v1843_v58, %v1842_v48  ;;  %v1847_v29 = vor.u32 %v1846_v5, %v1845_v59 }
 0x1ff   :  { %v1802_v56 = vxor.u32 2147483648, %v1801_v31  ;;  %v1850_v26 = vor.u32 %v1849_v41, %v1848_v18  ;;  %v1851_v4 = vshll.u32 %v2301_v17, %v1836_v42  ;;  %v1852_v25 = vshrl.u32 %v2302_v23, %v1837_v63 }
 0x200   :  { %1940 = vst [vmem:[#allocation9 + $0x20] sm:$0xff] %v1932_v52  ;;  %v1811_v30 = vadd.s32 3, %v1807_v28  ;;  %v1680_v11 = vsub.s32 0, %v1678_v44  ;;  %v1838_v9 = vshrl.u32 %v2297_v3, %v1837_v63  ;;  %v1870_v10 = vshll.u32 %v1830_v13, 8 }
 0x201   :  { %v1803_v8 = vsel %vm1720_vm8, %v1802_v56, %v1801_v31  ;;  %v1853_v54 = vor.u32 %v1852_v25, %v1851_v4  ;;  %vm1854_vm1 = vcmp.lt.s32.totalorder %v1835_v6, 1  ;;  %vm1857_vm2 = vcmp.lt.s32.totalorder %v1835_v6, 4 }
 0x202   :  { %v1806_v14 = vsel %vm3022_vm12, %v2755_v7, %v1803_v8  ;;  %v2109_v33 = vmin.u32 %v1680_v11, %v1678_v44  ;;  %v1859_v17 = vsel %vm1857_vm2, %v1847_v29, 2102212464  ;;  %v1862_v23 = vsel %vm1854_vm1, %v1841_v21, %v1844_v16 }
 0x203   :  { %2184 = vcosq.f32 %v1806_v14  ;;  %v1863_v62 = vsel %vm1857_vm2, %v1850_v26, 920167782  ;;  %vm1855_vm3 = vcmp.lt.s32.totalorder %v1835_v6, 2  ;;  %vm1856_vm4 = vcmp.lt.s32.totalorder %v1835_v6, 3 }
 0x204   :  { %2186 = vsinq.f32 %v1806_v14  ;;  %v1682_v47 = vclz %v2109_v33  ;;  %v1858_v0 = vsel %vm1854_vm1, %v1838_v9, %v1841_v21  ;;  %v1860_v2 = vsel %vm1856_vm4, %v1844_v16, %v1859_v17 }
 0x205   :  { %v1864_v42 = vsel %vm1856_vm4, %v1847_v29, %v1863_v62  ;;  %v1866_v50 = vsel %vm1854_vm1, %v1844_v16, %v1847_v29  ;;  %v1867_v40 = vsel %vm1857_vm2, %v1853_v54, 1326507024  ;;  %v1861_v63 = vsel %vm1855_vm3, %v1858_v0, %v1860_v2 }
 0x206   :  { %v2110_v24 = vadd.s32 4294967294, %v1682_v47  ;;  %v1865_v3 = vsel %vm1855_vm3, %v1862_v23, %v1864_v42  ;;  %v1868_v38 = vsel %vm1856_vm4, %v1850_v26, %v1867_v40  ;;  %v1812_v28 = vand.u32 3, %v1811_v30 }
 0x207   :  { %v1869_v37 = vsel %vm1855_vm3, %v1866_v50, %v1868_v38  ;;  %v3061_v60 = vmul.u32.u64.low %v1870_v10, %v1865_v3  ;;  %v3062_v45 = vmul.u32.u64.high %v1870_v10, %v1865_v3, %v3061_v60  ;;  %v1670_v12 = vadd.s32 %v3008_v35, %v3013_v32 }
 0x208   :  { %vm2111_vm5 = vcmp.lt.s32.totalorder %v2110_v24, 0  ;;  %v3064_v15 = vmul.u32.u64.low %v1870_v10, %v1869_v37  ;;  %v3065_v36 = vmul.u32.u64.high %v1870_v10, %v1869_v37, %v3064_v15  ;;  %v1877_v49 = vmul.u32 %v1870_v10, %v1861_v63 }
 0x209   :  { %v1685_v39 = vsel %vm2111_vm5, 0, %v2110_v24  ;;  %v1880_v1 = vadd.s32 1, %v3062_v45  ;;  %vm1817_vm7 = vcmp.eq.s32.totalorder %v1812_v28, 2  ;;  %vm1814_vm8 = vcmp.eq.s32.totalorder %v1812_v28, 0 }
 0x20a   :  { %v1686_v20 = vsub.s32 32, %v1685_v39  ;;  %v1690_v13 = vsub.s32 4294967266, %v1685_v39  ;;  %v1687_v58 = vshll.u32 %v1678_v44, %v1685_v39  ;;  %vm1879_vm6 = vc.u32 %v3065_v36, %v3061_v60 }
 0x20b   :  { %v1881_v53 = vsel %vm1879_vm6, %v1880_v1, %v3062_v45  ;;  %vm1813_vm9 = vcmp.lt.s32.totalorder %v1812_v28, 2  ;;  %vm1810_vm10 = vweird.f32 %v2755_v7  ;;  %v1700_v4 = vsub.s32 4, %v3039_v61 }
 0x20c   :  { %v1688_v43 = vshrl.u32 %v1670_v12, %v1686_v20  ;;  %v1691_v6 = vadd.s32 127, %v1690_v13  ;;  %v1882_v35 = vadd.s32 %v1881_v53, %v1877_v49  ;;  %vm1616_vm11 = vcmp.lt.s32.totalorder %v2877_v34, 0 }
 0x20d   :  { %v2185_v27 = vpop.eup %2184  ;;  %vm1615_vm12 = vcmp.le.f32.partialorder %v1614_v22, 0.7853982  ;;  %v1701_v11 = vsel %vm1616_vm11, %v1700_v4, %v3039_v61  ;;  %v1878_v0 = vadd.s32 %v3061_v60, %v3065_v36  ;;  %vm1706_vm1 = vweird.f32 %v2877_v34 }
 0x20e   :  { %v2187_v51 = vpop.eup %2186  ;;  %v1818_v5 = vxor.u32 2147483648, %v2185_v27  ;;  %v1689_v46 = vor.u32 %v1688_v43, %v1687_v58  ;;  %v1692_v48 = vshll.u32 %v1691_v6, 23  ;;  %v1883_v18 = vadd.s32 536870912, %v1882_v35 }
 0x20f   :  { %v1815_v31 = vxor.u32 2147483648, %v2187_v51  ;;  %v1703_v10 = vsel %vm1615_vm12, 0, %v1701_v11  ;;  %vm1824_vm2 = vcmp.lt.s32.totalorder %v2966_v19, 0  ;;  %vm1823_vm3 = vcmp.le.f32.partialorder %v1822_v57, 0.7853982 }
 0x210   :  { %v1819_v32 = vsel %vm1817_vm7, %v1818_v5, %v2187_v51  ;;  %v1693_v59 = vor.u32 4788187, %v1692_v48  ;;  %v1696_v21 = vcvt.s32.f32 %v1689_v46  ;;  %v1884_v16 = vshrl.u32 %v1883_v18, 30 }
 0x211   :  { %v1816_v52 = vsel %vm1814_vm8, %v2185_v27, %v1815_v31  ;;  %v1707_v17 = vadd.s32 3, %v1703_v10  ;;  %vm1914_vm7 = vweird.f32 %v2966_v19 }
 0x212   :  { %v1820_v41 = vsel %vm1813_vm9, %v1816_v52, %v1819_v32  ;;  %v1694_v44 = vand.u32 2147483647, %v1693_v59  ;;  %v1885_v25 = vshll.u32 %v1884_v16, 30  ;;  %v1908_v49 = vsub.s32 4, %v1884_v16 }
 0x213   :  { %v1821_v56 = vsel %vm1810_vm10, nan, %v1820_v41  ;;  %v1708_v47 = vand.u32 3, %v1707_v17 }
 0x214   :  { %v1934_v29 = vmul.f32 %v2500_v55, %v1821_v56  ;;  %v1697_v26 = vmul.f32 %v1696_v21, %v1694_v44  ;;  %v1886_v30 = vsub.s32 %v1882_v35, %v1885_v25  ;;  %v1909_v58 = vsel %vm1824_vm2, %v1908_v49, %v1884_v16 }
 0x215   :  { %vm1713_vm15 = vcmp.eq.s32.totalorder %v1708_v47, 2  ;;  %vm1710_vm0 = vcmp.eq.s32.totalorder %v1708_v47, 0  ;;  %vm1709_vm14 = vcmp.lt.s32.totalorder %v1708_v47, 2 }
 0x216   :  { %1942 = vst [vmem:[#allocation9 + $0x30] sm:$0xff] %v1934_v29  ;;  %v1698_v8 = vxor.u32 2147483648, %v1697_v26  ;;  %v1888_v14 = vsub.s32 0, %v1886_v30 }
 0x218   :  { %v1699_v7 = vsel %vm1616_vm11, %v1698_v8, %v1697_v26  ;;  %v2117_v54 = vmin.u32 %v1888_v14, %v1886_v30 }
 0x219   :  { %v1702_v9 = vsel %vm1615_vm12, %v2877_v34, %v1699_v7  ;;  %v1911_v34 = vsel %vm1823_vm3, 0, %v1909_v58 }
 0x21a   :  { %2188 = vcosq.f32 %v1702_v9  ;;  %v1890_v33 = vclz %v2117_v54  ;;  %v1915_v6 = vadd.s32 3, %v1911_v34 }
 0x21b   :  { %2190 = vsinq.f32 %v1702_v9 }
 0x21c   :  { %v2118_v23 = vadd.s32 4294967294, %v1890_v33  ;;  %v1916_v51 = vand.u32 3, %v1915_v6 }
 0x21e   :  { %vm2119_vm13 = vcmp.lt.s32.totalorder %v2118_v23, 0  ;;  %vm1921_vm4 = vcmp.eq.s32.totalorder %v1916_v51, 2  ;;  %vm1918_vm5 = vcmp.eq.s32.totalorder %v1916_v51, 0  ;;  %vm1917_vm6 = vcmp.lt.s32.totalorder %v1916_v51, 2 }
 0x21f   :  { %v1893_v62 = vsel %vm2119_vm13, 0, %v2118_v23 }
 0x220   :  { %v1894_v2 = vsub.s32 32, %v1893_v62  ;;  %v1898_v22 = vsub.s32 4294967266, %v1893_v62  ;;  %v1895_v50 = vshll.u32 %v1886_v30, %v1893_v62 }
 0x222   :  { %v1896_v61 = vshrl.u32 %v1878_v0, %v1894_v2  ;;  %v1899_v40 = vadd.s32 127, %v1898_v22 }
 0x224   :  { %v2189_v42 = vpop.eup %2188  ;;  %v1897_v37 = vor.u32 %v1896_v61, %v1895_v50  ;;  %v1900_v45 = vshll.u32 %v1899_v40, 23 }
 0x225   :  { %v2191_v24 = vpop.eup %2190  ;;  %v1714_v3 = vxor.u32 2147483648, %v2189_v42 }
 0x226   :  { %v1711_v38 = vxor.u32 2147483648, %v2191_v24  ;;  %v1901_v28 = vor.u32 4788187, %v1900_v45  ;;  %v1904_v12 = vcvt.s32.f32 %v1897_v37 }
 0x227   :  { %v1715_v63 = vsel %vm1713_vm15, %v1714_v3, %v2191_v24 }
 0x228   :  { %v1712_v15 = vsel %vm1710_vm0, %v2189_v42, %v1711_v38  ;;  %v1902_v39 = vand.u32 2147483647, %v1901_v28 }
 0x229   :  { %v1716_v60 = vsel %vm1709_vm14, %v1712_v15, %v1715_v63 }
 0x22a   :  { %v1717_v36 = vsel %vm1706_vm1, nan, %v1716_v60  ;;  %v1905_v13 = vmul.f32 %v1904_v12, %v1902_v39 }
 0x22b   :  { %v1933_v20 = vmul.f32 %v2500_v55, %v1717_v36 }
 0x22c   :  { %v1906_v1 = vxor.u32 2147483648, %v1905_v13 }
 0x22d   :  { %1941 = vst [vmem:[#allocation9 + $0x28] sm:$0xff] %v1933_v20 }
 0x22e   :  { %v1907_v27 = vsel %vm1824_vm2, %v1906_v1, %v1905_v13 }
 0x22f   :  { %v1910_v43 = vsel %vm1823_vm3, %v2966_v19, %v1907_v27 }
 0x230   :  { %2192 = vcosq.f32 %v1910_v43 }
 0x231   :  { %2194 = vsinq.f32 %v1910_v43 }
 0x23a   :  { %v2193_v5 = vpop.eup %2192 }
 0x23b   :  { %v2195_v53 = vpop.eup %2194  ;;  %v1922_v31 = vxor.u32 2147483648, %v2193_v5 }
 0x23c   :  { %v1919_v46 = vxor.u32 2147483648, %v2195_v53 }
 0x23d   :  { %v1923_v48 = vsel %vm1921_vm4, %v1922_v31, %v2195_v53 }
 0x23e   :  { %v1920_v35 = vsel %vm1918_vm5, %v2193_v5, %v1919_v46 }
 0x23f   :  { %v1924_v57 = vsel %vm1917_vm6, %v1920_v35, %v1923_v48 }
 0x240   :  { %v1925_v32 = vsel %vm1914_vm7, nan, %v1924_v57 }
 0x241   :  { %v1935_v52 = vmul.f32 %v2500_v55, %v1925_v32 }
 0x243   :  { %1943 = vst [vmem:[#allocation9 + $0x38] sm:$0xff] %v1935_v52 }
 0x244   :  { %2275 = shalt.err (!%p2272_p0)
}
 0x245   :  { %s2276_s30 = scalar_lea.hbm %s3105_s4, 1024 }
 0x246   :  { %p2277_p1 = scmp.ne.s32.totalorder %s3105_s4, %s2276_s30  ;;  %p2280_p2 = scmp.lt.u32.totalorder %s2276_s30, %s3105_s4 }
 0x248   :  { %p2282_p3 = pnand %p2280_p2, %p2277_p1 }
 0x24a   :  { %2285 = shalt.err (!%p2282_p3)
}
 0x24b   :  { %1953 = dma.vmem_to_hbm [thread:$0]  %s1951_s26, 1024, %s3105_s4, [#allocation5]  }
 0x24c   :  { %2290 = dma.done.wait [#allocation5], 1024  }
 0x24d   :  { %2291 = vsyncadd [#allocation5], 4294966272 }
 0x24e   :  { %1957 = vsyncpa [#allocation4], 1 }
 0x24f   :  { %1958 = vsyncpa [#allocation7], 1 }
 0x250   :  { %1959 = vsyncpa [#allocation5], 1 }

</bundles_post_ra>
